<compile_context>
chip_gen: v5e
topology: v5e:2x2
jax: 0.10.0
libtpu: 0.0.40
codegen_flags: <defaults>
</compile_context>

<pallas_src>
import jax
import jax.numpy as jnp
from jax.experimental import pallas as pl
from jax.experimental.pallas import tpu as pltpu

IN_FEATURES = 256
HIDDEN = 512
LATENT_DIM = 16
HEAD_TILE = 128               # one full lane tile per head
HEAD_WIDTH = 2 * HEAD_TILE    # fused [mu-tile | logvar-tile]
BN_EPS = 1e-5
LRELU_SLOPE = 0.2


def _leaky_relu(x, slope=LRELU_SLOPE):
    return jnp.where(x > 0, x, slope * x)


def encoder_kernel(
    x_ref,                 # (B, 256)   f32 flattened image
    w1_ref, b1_ref,        # (256, 512) bf16, (1, 512) f32
    w2_ref, b2_ref,        # (512, 512) bf16, (1, 512) f32
    gamma_ref, beta_ref,   # (1, 512)   f32   BatchNorm1d affine
    wh_ref, bh_ref,        # (512, 256) bf16, (1, 256) f32  fused [mu | logvar] head
    eps_ref,               # (B, 128)   f32   reparameterization noise (lane-padded)
    z_ref,                 # (B, 128)   f32   lane-dense output (z in lanes 0..15)
):
    B = x_ref.shape[0]
    inv_b = 1.0 / B

    # Linear(256, 512) + LeakyReLU(0.2): bf16 operands, f32 accumulation on MXU.
    x = x_ref[...].astype(jnp.bfloat16)
    h1 = jnp.dot(x, w1_ref[...], preferred_element_type=jnp.float32) + b1_ref[...]
    h1 = _leaky_relu(h1)

    # Linear(512, 512)
    h2 = jnp.dot(h1.astype(jnp.bfloat16), w2_ref[...],
                 preferred_element_type=jnp.float32) + b2_ref[...]

    # BatchNorm1d(512), training-mode batch statistics (biased /B variance).
    # Single-pass sum / sum-of-squares; variance clamped to >= 0 before rsqrt
    # (f32 rounding can make E[x^2] - E[x]^2 slightly negative).  Gamma is
    # folded into the rsqrt scale so the normalize is one FMA per element.
    s = jnp.sum(h2, axis=0, keepdims=True)
    sq = jnp.sum(h2 * h2, axis=0, keepdims=True)
    mean = s * inv_b
    var = jnp.maximum(sq * inv_b - mean * mean, 0.0)
    scale = jax.lax.rsqrt(var + BN_EPS) * gamma_ref[...]
    shift = beta_ref[...] - mean * scale
    h2 = _leaky_relu(h2 * scale + shift)

    # Fused mu/logvar head: one (B,512)x(512,256) MXU pass.  mu occupies the
    # first 128-lane tile, logvar the second -> both slices are tile-aligned.
    head = jnp.dot(h2.astype(jnp.bfloat16), wh_ref[...],
                   preferred_element_type=jnp.float32) + bh_ref[...]
    mu = head[:, :HEAD_TILE]
    logvar = head[:, HEAD_TILE:]

    # Reparameterization: z = mu + eps * exp(logvar / 2).  Lanes 16..127 are
    # zero (zero weights/bias and zero-padded eps) and are dropped by the
    # wrapper-side slice; the store itself stays lane-dense.
    z_ref[...] = mu + eps_ref[...] * jnp.exp(logvar * 0.5)


def pack_params(params):
    """One-time packing: bf16 weight casts + fused/lane-padded mu||logvar head.

    Done ONCE at init (not per forward) so the hot path reads only the packed
    bf16 copies from HBM and launches a single Pallas kernel.
    """
    def pad_head(w, b):
        # mu -> lanes [0, 16) of tile 0; logvar -> lanes [0, 16) of tile 1.
        wh = jnp.zeros((HIDDEN, HEAD_WIDTH), jnp.float32)
        wh = wh.at[:, :LATENT_DIM].set(w[0]).at[:, HEAD_TILE:HEAD_TILE + LATENT_DIM].set(w[1])
        bh = jnp.zeros((1, HEAD_WIDTH), jnp.float32)
        bh = bh.at[:, :LATENT_DIM].set(b[0]).at[:, HEAD_TILE:HEAD_TILE + LATENT_DIM].set(b[1])
        return wh.astype(jnp.bfloat16), bh

    wh, bh = pad_head((params["wmu"], params["wlv"]), (params["bmu"], params["blv"]))
    return {
        "w1": params["w1"].astype(jnp.bfloat16), "b1": params["b1"],
        "w2": params["w2"].astype(jnp.bfloat16), "b2": params["b2"],
        "gamma": params["gamma"], "beta": params["beta"],
        "wh": wh, "bh": bh,
    }


def encoder_forward(img, packed, eps_padded):
    """img: (B, C, H, W) flattened to (B, 256) like img.view(B, -1).
    packed: output of pack_params.  eps_padded: (B, 128) noise (lanes 0..15 live).
    Returns z: (B, LATENT_DIM) f32."""
    B = img.shape[0]
    x = img.reshape(B, -1).astype(jnp.float32)
    assert x.shape[1] == IN_FEATURES, f"flattened features {x.shape[1]} != {IN_FEATURES}"
    assert eps_padded.shape == (B, HEAD_TILE)

    args = (
        x,
        packed["w1"], packed["b1"],
        packed["w2"], packed["b2"],
        packed["gamma"], packed["beta"],
        packed["wh"], packed["bh"],
        eps_padded,
    )

    # Tiny problem (~0.9 MiB bf16 weights + a few KiB activations): everything
    # resident in VMEM, single grid point, default scoped VMEM limit on all gens.
    vmem_spec = pl.BlockSpec(memory_space=pltpu.MemorySpace.VMEM)
    z_pad = pl.pallas_call(
        encoder_kernel,
        out_shape=jax.ShapeDtypeStruct((B, HEAD_TILE), jnp.float32),
        in_specs=[vmem_spec] * len(args),
        out_specs=vmem_spec,
    )(*args)
    return z_pad[:, :LATENT_DIM]


def init_params(key):
    """PyTorch-style init: U(-1/sqrt(fan_in), 1/sqrt(fan_in)) for Linear,
    gamma=1 / beta=0 for BatchNorm1d.  Stored as (in, out) so the kernel does x @ W + b."""
    def linear(k, fan_in, fan_out):
        kw, kb = jax.random.split(k)
        bound = 1.0 / jnp.sqrt(fan_in)
        w = jax.random.uniform(kw, (fan_in, fan_out), jnp.float32, -bound, bound)
        b = jax.random.uniform(kb, (1, fan_out), jnp.float32, -bound, bound)
        return w, b

    k1, k2, k3, k4 = jax.random.split(key, 4)
    w1, b1 = linear(k1, IN_FEATURES, HIDDEN)
    w2, b2 = linear(k2, HIDDEN, HIDDEN)
    wmu, bmu = linear(k3, HIDDEN, LATENT_DIM)
    wlv, blv = linear(k4, HIDDEN, LATENT_DIM)
    return {
        "w1": w1, "b1": b1,
        "w2": w2, "b2": b2,
        "gamma": jnp.ones((1, HIDDEN), jnp.float32),
        "beta": jnp.zeros((1, HIDDEN), jnp.float32),
        "wmu": wmu, "bmu": bmu,
        "wlv": wlv, "blv": blv,
    }


if __name__ == "__main__":
    key = jax.random.PRNGKey(0)
    k_img, k_params, k_eps = jax.random.split(key, 3)

    B, C, H, W = 2, 1, 16, 16          # flattens to 256 features, matching Linear(256, 512)
    img = jax.random.normal(k_img, (B, C, H, W), jnp.float32)

    params = init_params(k_params)
    packed = pack_params(params)       # one-time packing, outside the hot path

    # Reparameterization noise, lane-padded once to (B, 128) for a dense combine.
    eps = jax.random.normal(k_eps, (B, LATENT_DIM), jnp.float32)
    eps_padded = jnp.pad(eps, ((0, 0), (0, HEAD_TILE - LATENT_DIM)))

    z = encoder_forward(img, packed, eps_padded)
    jax.block_until_ready(z)
    assert z.shape == (B, LATENT_DIM) and z.dtype == jnp.float32
    assert bool(jnp.all(jnp.isfinite(z)))
    print("KERNEL_OK")
</pallas_src>

<mosaic_0001>
module attributes {stable_mosaic.version = 11 : i64} {
  func.func @encoder_kernel(%arg0: memref<2x256xf32, #tpu.memory_space<vmem>>, %arg1: memref<256x512xbf16, #tpu.memory_space<vmem>>, %arg2: memref<1x512xf32, #tpu.memory_space<vmem>>, %arg3: memref<512x512xbf16, #tpu.memory_space<vmem>>, %arg4: memref<1x512xf32, #tpu.memory_space<vmem>>, %arg5: memref<1x512xf32, #tpu.memory_space<vmem>>, %arg6: memref<1x512xf32, #tpu.memory_space<vmem>>, %arg7: memref<512x256xbf16, #tpu.memory_space<vmem>>, %arg8: memref<1x256xf32, #tpu.memory_space<vmem>>, %arg9: memref<2x128xf32, #tpu.memory_space<vmem>>, %arg10: memref<2x128xf32, #tpu.memory_space<vmem>>) attributes {dimension_semantics = [], scalar_prefetch = 0 : i64, scratch_operands = 0 : i64, tpu.core_type = #tpu.core_type<tc>} {
    %c0 = arith.constant 0 : index
    %c0_0 = arith.constant 0 : index
    %0 = vector.load %arg0[%c0, %c0_0] : memref<2x256xf32, #tpu.memory_space<vmem>>, vector<2x256xf32>
    %1 = arith.truncf %0 : vector<2x256xf32> to vector<2x256xbf16>
    %c0_1 = arith.constant 0 : index
    %c0_2 = arith.constant 0 : index
    %2 = vector.load %arg1[%c0_1, %c0_2] : memref<256x512xbf16, #tpu.memory_space<vmem>>, vector<256x512xbf16>
    %cst = arith.constant dense<0.000000e+00> : vector<2x512xf32>
    %3 = tpu.matmul %1, %2, %cst {dimension_numbers = #tpu.dot_dimension_numbers<[1], [0], [0], [1], [0, 0, 1, 1], [], []>} : vector<2x256xbf16>, vector<256x512xbf16>, vector<2x512xf32> -> vector<2x512xf32>
    %c0_3 = arith.constant 0 : index
    %c0_4 = arith.constant 0 : index
    %4 = vector.load %arg2[%c0_3, %c0_4] : memref<1x512xf32, #tpu.memory_space<vmem>>, vector<1x512xf32>
    %5 = vector.broadcast %4 : vector<1x512xf32> to vector<2x512xf32>
    %6 = arith.addf %3, %5 : vector<2x512xf32>
    %cst_5 = arith.constant 0.000000e+00 : f32
    %7 = vector.broadcast %cst_5 : f32 to vector<2x512xf32>
    %8 = arith.cmpf ogt, %6, %7 : vector<2x512xf32>
    %cst_6 = arith.constant 2.000000e-01 : f32
    %9 = vector.broadcast %cst_6 : f32 to vector<2x512xf32>
    %10 = arith.mulf %9, %6 : vector<2x512xf32>
    %11 = arith.select %8, %6, %10 : vector<2x512xi1>, vector<2x512xf32>
    %12 = arith.truncf %11 : vector<2x512xf32> to vector<2x512xbf16>
    %c0_7 = arith.constant 0 : index
    %c0_8 = arith.constant 0 : index
    %13 = vector.load %arg3[%c0_7, %c0_8] : memref<512x512xbf16, #tpu.memory_space<vmem>>, vector<512x512xbf16>
    %cst_9 = arith.constant dense<0.000000e+00> : vector<2x512xf32>
    %14 = tpu.matmul %12, %13, %cst_9 {dimension_numbers = #tpu.dot_dimension_numbers<[1], [0], [0], [1], [0, 0, 1, 1], [], []>} : vector<2x512xbf16>, vector<512x512xbf16>, vector<2x512xf32> -> vector<2x512xf32>
    %c0_10 = arith.constant 0 : index
    %c0_11 = arith.constant 0 : index
    %15 = vector.load %arg4[%c0_10, %c0_11] : memref<1x512xf32, #tpu.memory_space<vmem>>, vector<1x512xf32>
    %16 = vector.broadcast %15 : vector<1x512xf32> to vector<2x512xf32>
    %17 = arith.addf %14, %16 : vector<2x512xf32>
    %cst_12 = arith.constant dense<0.000000e+00> : vector<512xf32>
    %18 = vector.multi_reduction <add>, %17, %cst_12 [0] : vector<2x512xf32> to vector<512xf32>
    %19 = vector.shape_cast %18 : vector<512xf32> to vector<1x512xf32>
    %20 = arith.mulf %17, %17 : vector<2x512xf32>
    %cst_13 = arith.constant dense<0.000000e+00> : vector<512xf32>
    %21 = vector.multi_reduction <add>, %20, %cst_13 [0] : vector<2x512xf32> to vector<512xf32>
    %22 = vector.shape_cast %21 : vector<512xf32> to vector<1x512xf32>
    %cst_14 = arith.constant 5.000000e-01 : f32
    %23 = vector.broadcast %cst_14 : f32 to vector<1x512xf32>
    %24 = arith.mulf %19, %23 : vector<1x512xf32>
    %cst_15 = arith.constant 5.000000e-01 : f32
    %25 = vector.broadcast %cst_15 : f32 to vector<1x512xf32>
    %26 = arith.mulf %22, %25 : vector<1x512xf32>
    %27 = arith.mulf %24, %24 : vector<1x512xf32>
    %28 = arith.subf %26, %27 : vector<1x512xf32>
    %cst_16 = arith.constant 0.000000e+00 : f32
    %29 = vector.broadcast %cst_16 : f32 to vector<1x512xf32>
    %30 = arith.maximumf %28, %29 : vector<1x512xf32>
    %cst_17 = arith.constant 9.99999974E-6 : f32
    %31 = vector.broadcast %cst_17 : f32 to vector<1x512xf32>
    %32 = arith.addf %30, %31 : vector<1x512xf32>
    %33 = math.rsqrt %32 : vector<1x512xf32>
    %c0_18 = arith.constant 0 : index
    %c0_19 = arith.constant 0 : index
    %34 = vector.load %arg5[%c0_18, %c0_19] : memref<1x512xf32, #tpu.memory_space<vmem>>, vector<1x512xf32>
    %35 = arith.mulf %33, %34 : vector<1x512xf32>
    %c0_20 = arith.constant 0 : index
    %c0_21 = arith.constant 0 : index
    %36 = vector.load %arg6[%c0_20, %c0_21] : memref<1x512xf32, #tpu.memory_space<vmem>>, vector<1x512xf32>
    %37 = arith.mulf %24, %35 : vector<1x512xf32>
    %38 = arith.subf %36, %37 : vector<1x512xf32>
    %39 = vector.broadcast %35 : vector<1x512xf32> to vector<2x512xf32>
    %40 = arith.mulf %17, %39 : vector<2x512xf32>
    %41 = vector.broadcast %38 : vector<1x512xf32> to vector<2x512xf32>
    %42 = arith.addf %40, %41 : vector<2x512xf32>
    %cst_22 = arith.constant 0.000000e+00 : f32
    %43 = vector.broadcast %cst_22 : f32 to vector<2x512xf32>
    %44 = arith.cmpf ogt, %42, %43 : vector<2x512xf32>
    %cst_23 = arith.constant 2.000000e-01 : f32
    %45 = vector.broadcast %cst_23 : f32 to vector<2x512xf32>
    %46 = arith.mulf %45, %42 : vector<2x512xf32>
    %47 = arith.select %44, %42, %46 : vector<2x512xi1>, vector<2x512xf32>
    %48 = arith.truncf %47 : vector<2x512xf32> to vector<2x512xbf16>
    %c0_24 = arith.constant 0 : index
    %c0_25 = arith.constant 0 : index
    %49 = vector.load %arg7[%c0_24, %c0_25] : memref<512x256xbf16, #tpu.memory_space<vmem>>, vector<512x256xbf16>
    %cst_26 = arith.constant dense<0.000000e+00> : vector<2x256xf32>
    %50 = tpu.matmul %48, %49, %cst_26 {dimension_numbers = #tpu.dot_dimension_numbers<[1], [0], [0], [1], [0, 0, 1, 1], [], []>} : vector<2x512xbf16>, vector<512x256xbf16>, vector<2x256xf32> -> vector<2x256xf32>
    %c0_27 = arith.constant 0 : index
    %c0_28 = arith.constant 0 : index
    %51 = vector.load %arg8[%c0_27, %c0_28] : memref<1x256xf32, #tpu.memory_space<vmem>>, vector<1x256xf32>
    %52 = vector.broadcast %51 : vector<1x256xf32> to vector<2x256xf32>
    %53 = arith.addf %50, %52 : vector<2x256xf32>
    %54 = vector.extract_strided_slice %53 {offsets = [0, 0], sizes = [2, 128], strides = [1, 1]} : vector<2x256xf32> to vector<2x128xf32>
    %55 = vector.extract_strided_slice %53 {offsets = [0, 128], sizes = [2, 128], strides = [1, 1]} : vector<2x256xf32> to vector<2x128xf32>
    %c0_29 = arith.constant 0 : index
    %c0_30 = arith.constant 0 : index
    %56 = vector.load %arg9[%c0_29, %c0_30] : memref<2x128xf32, #tpu.memory_space<vmem>>, vector<2x128xf32>
    %cst_31 = arith.constant 5.000000e-01 : f32
    %57 = vector.broadcast %cst_31 : f32 to vector<2x128xf32>
    %58 = arith.mulf %55, %57 : vector<2x128xf32>
    %59 = math.exp %58 : vector<2x128xf32>
    %60 = arith.mulf %56, %59 : vector<2x128xf32>
    %61 = arith.addf %54, %60 : vector<2x128xf32>
    %c0_32 = arith.constant 0 : index
    %c0_33 = arith.constant 0 : index
    %62 = vector.load %arg10[%c0_32, %c0_33] : memref<2x128xf32, #tpu.memory_space<vmem>>, vector<2x128xf32>
    tpu.vector_store %arg10[%c0_32, %c0_33], %61 {strides = array<i32>} : memref<2x128xf32, #tpu.memory_space<vmem>>, vector<2x128xf32>,
    return
  }
}

</mosaic_0001>

<bundles_post_ra>
// kernel: tpu_custom_call.1
= control target key start
LH: loop header
LB: loop body
LE: loop exit
PB: predicated region body
PF: predicated region fallthrough
CT: control target
= control target key end

     0   :  { %15 = vsyncpa [#allocation3], 0  ;;  %s4171_s0 = inlined_call_operand.hbm [shape: f32[2,256], index: 0, kind: input, shape index: {}]   ;;  %s4172_s1 = inlined_call_operand.hbm [shape: bf16[256,512], index: 1, kind: input, shape index: {}]   ;;  %s4173_s2 = inlined_call_operand.hbm [shape: f32[1,512], index: 2, kind: input, shape index: {}]   ;;  %s4174_s3 = inlined_call_operand.hbm [shape: bf16[512,512], index: 3, kind: input, shape index: {}]   ;;  %s4175_s4 = inlined_call_operand.hbm [shape: f32[1,512], index: 4, kind: input, shape index: {}]   ;;  %s4176_s5 = inlined_call_operand.vmem [shape: f32[1,512], index: 5, kind: input, shape index: {}]   ;;  %s4177_s6 = inlined_call_operand.hbm [shape: f32[1,512], index: 6, kind: input, shape index: {}]   ;;  %s4178_s7 = inlined_call_operand.hbm [shape: bf16[512,256], index: 7, kind: input, shape index: {}]   ;;  %s4179_s8 = inlined_call_operand.vmem [shape: f32[1,256], index: 8, kind: input, shape index: {}]   ;;  %s4180_s9 = inlined_call_operand.vmem [shape: f32[2,128], index: 9, kind: input, shape index: {}]   ;;  %s4181_s10 = inlined_call_operand.hbm [shape: f32[2,128], index: 10, kind: output, shape index: {}]  }
   0x1   :  { %16 = vsyncpa [#allocation6], 0 }
   0x2   :  { %17 = vsyncpa [#allocation9], 0 }
   0x3   :  { %18 = vsyncpa [#allocation12], 0  ;;  %s35_s15 = sshll.u32 %s4172_s1, 4  ;;  %s36_s15 = int_to_ptr.hbm [resolvable:$true] %s35_s15 }
   0x4   :  { %19 = vsyncpa [#allocation4], 0  ;;  %s3866_s16 = smov [#allocation5]   ;;  %s59_s20 = sshll.u32 %s4174_s3, 4  ;;  %s60_s20 = int_to_ptr.hbm [resolvable:$true] %s59_s20 }
   0x5   :  { %s37_s17 = sshll.u32 %s3866_s16, 4  ;;  %s3867_s21 = smov 256   ;;  %s38_s17 = int_to_ptr.vmem [resolvable:$true] %s37_s17 }
   0x6   :  { %s3868_s22 = smov 16   ;;  %s3869_s23 = smov [#allocation8]  }
   0x7   :  { %43 = dma.hbm_to_vmem [thread:$0]  %s36_s15, 8192, %s38_s17, [#allocation6], %s3867_s21, %s3867_s21, %s3868_s22  }
   0x8   :  { %s61_s24 = sshll.u32 %s3869_s23, 4  ;;  %s86_s27 = sshll.u32 %s4177_s6, 4  ;;  %s62_s24 = int_to_ptr.vmem [resolvable:$true] %s61_s24  ;;  %s87_s27 = int_to_ptr.hbm [resolvable:$true] %s86_s27 }
   0x9   :  { %67 = dma.hbm_to_vmem [thread:$0]  %s60_s20, 16384, %s62_s24, [#allocation9], %s3867_s21, %s3867_s21, %s3868_s22  }
   0xa   :  { %s25_s29 = sshll.u32 %s4171_s0, 4  ;;  %s3870_s30 = smov [#allocation11]   ;;  %s26_s29 = int_to_ptr.hbm [resolvable:$true] %s25_s29 }
   0xb   :  { %s88_s11 = sshll.u32 %s3870_s30, 4  ;;  %s3871_s3 = smov [#allocation2]   ;;  %s89_s11 = int_to_ptr.vmem [resolvable:$true] %s88_s11 }
   0xc   :  { %91 = dma.hbm_to_vmem [thread:$0]  %s87_s27, 64, %s89_s11, [#allocation12]  }
   0xd   :  { %s27_s12 = sshll.u32 %s3871_s3, 4  ;;  %s49_s15 = sshll.u32 %s4173_s2, 4  ;;  %s28_s12 = int_to_ptr.vmem [resolvable:$true] %s27_s12  ;;  %s50_s15 = int_to_ptr.hbm [resolvable:$true] %s49_s15 }
   0xe   :  { %30 = dma.hbm_to_vmem [thread:$0]  %s26_s29, 64, %s28_s12, [#allocation3]  }
   0xf   :  { %s73_s17 = sshll.u32 %s4175_s4, 4  ;;  %s3872_s18 = smov [#allocation7]   ;;  %s74_s17 = int_to_ptr.hbm [resolvable:$true] %s73_s17 }
  0x10   :  { %s51_s0 = sshll.u32 %s3872_s18, 4  ;;  %s3873_s19 = smov [#allocation10]   ;;  %s52_s0 = int_to_ptr.vmem [resolvable:$true] %s51_s0 }
  0x11   :  { %54 = dma.hbm_to_vmem [thread:$0]  %s50_s15, 64, %s52_s0, [#allocation6]  }
  0x12   :  { %s75_s20 = sshll.u32 %s3873_s19, 4  ;;  %s96_s23 = sshll.u32 %s4178_s7, 4  ;;  %s76_s20 = int_to_ptr.vmem [resolvable:$true] %s75_s20  ;;  %s97_s23 = int_to_ptr.hbm [resolvable:$true] %s96_s23 }
  0x13   :  { %78 = dma.hbm_to_vmem [thread:$0]  %s74_s17, 64, %s76_s20, [#allocation9]  }
  0x14   :  { %s3874_s2 = smov [#allocation13]   ;;  %s3875_s25 = smov 128  }
  0x15   :  { %s98_s24 = sshll.u32 %s3874_s2, 4  ;;  %s3876_s26 = smov 8   ;;  %s99_s24 = int_to_ptr.vmem [resolvable:$true] %s98_s24 }
  0x16   :  { %104 = dma.hbm_to_vmem [thread:$0]  %s97_s23, 8192, %s99_s24, [#allocation12], %s3875_s25, %s3875_s25, %s3876_s26  }
  0x17   :  { %3856 = dma.done.wait [#allocation3], 64  }
  0x18   :  { %3857 = vsyncadd [#allocation3], 4294967232 }
  0x19   :  { %3858 = dma.done.wait [#allocation6], 8256  }
  0x1a   :  { %3859 = vsyncadd [#allocation6], 4294959040 }
  0x1b   :  { %3860 = dma.done.wait [#allocation9], 16448  }
  0x1c   :  { %3861 = vsyncadd [#allocation9], 4294950848 }
  0x1d   :  { %3862 = dma.done.wait [#allocation12], 8256  }
  0x1e   :  { %3863 = vsyncadd [#allocation12], 4294959040  ;;  %v2476_v0 = vld [vmem:[#allocation5 + $0xe0] sm:$0xf]  ;;  %v3416_v1 = vld [vmem:[#allocation5 + $0xec] sm:$0xf0] }
  0x1f   :  { %v2604_v2 = vld [vmem:[#allocation5 + $0x1e0] sm:$0xf]  ;;  %v2477_v3 = vor.u32 %v3416_v1, %v2476_v0  ;;  %v3448_v4 = vld [vmem:[#allocation5 + $0x1ec] sm:$0xf0]  ;;  %v3414_v5 = vld [vmem:[#allocation5 + $0xe4] sm:$0xf] }
  0x20   :  { %v2478_v6 = vld [vmem:[#allocation5 + $0xf0] sm:$0xf0]  ;;  %v2605_v7 = vor.u32 %v3448_v4, %v2604_v2  ;;  %v3446_v9 = vld [vmem:[#allocation5 + $0x1e4] sm:$0xf]  ;;  %v2460_v11 = vld [vmem:[#allocation5 + $0xc0] sm:$0xf] }
  0x21   :  { %v2481_v8 = vor.u32 %v3414_v5, %v2478_v6  ;;  %v2606_v10 = vld [vmem:[#allocation5 + $0x1f0] sm:$0xf0]  ;;  %540 = vmatpush.bf16.msra.mxu0 %v2477_v3  ;;  %v3412_v13 = vld [vmem:[#allocation5 + $0xcc] sm:$0xf0]  ;;  %v2588_v14 = vld [vmem:[#allocation5 + $0x1c0] sm:$0xf] }
  0x22   :  { %v2609_v12 = vor.u32 %v3446_v9, %v2606_v10  ;;  %v3444_v15 = vld [vmem:[#allocation5 + $0x1cc] sm:$0xf0]  ;;  %553 = vmatpush.bf16.msra.mxu1 %v2605_v7  ;;  %v2461_v16 = vor.u32 %v3412_v13, %v2460_v11  ;;  %v3410_v18 = vld [vmem:[#allocation5 + $0xc4] sm:$0xf]  ;;  %v2462_v19 = vld [vmem:[#allocation5 + $0xd0] sm:$0xf0] }
  0x23   :  { %566 = vmatpush.bf16.msra.mxu2 %v2481_v8  ;;  %v2589_v17 = vor.u32 %v3444_v15, %v2588_v14  ;;  %v3442_v20 = vld [vmem:[#allocation5 + $0x1c4] sm:$0xf]  ;;  %v2465_v21 = vor.u32 %v3410_v18, %v2462_v19  ;;  %v2590_v22 = vld [vmem:[#allocation5 + $0x1d0] sm:$0xf0]  ;;  %v2444_v23 = vld [vmem:[#allocation5 + $0xa0] sm:$0xf] }
  0x24   :  { %579 = vmatpush.bf16.msra.mxu3 %v2609_v12  ;;  %v3408_v24 = vld [vmem:[#allocation5 + $0xac] sm:$0xf0]  ;;  %v2593_v25 = vor.u32 %v3442_v20, %v2590_v22  ;;  %v2572_v26 = vld [vmem:[#allocation5 + $0x1a0] sm:$0xf]  ;;  %v3406_v28 = vld [vmem:[#allocation5 + $0xa4] sm:$0xf] }
  0x25   :  { %v3440_v27 = vld [vmem:[#allocation5 + $0x1ac] sm:$0xf0]  ;;  %541 = vmatpush.bf16.msra.mxu0 %v2461_v16  ;;  %v2445_v29 = vor.u32 %v3408_v24, %v2444_v23  ;;  %v2446_v30 = vld [vmem:[#allocation5 + $0xb0] sm:$0xf0]  ;;  %v3438_v31 = vld [vmem:[#allocation5 + $0x1a4] sm:$0xf] }
  0x26   :  { %v2574_v32 = vld [vmem:[#allocation5 + $0x1b0] sm:$0xf0]  ;;  %554 = vmatpush.bf16.msra.mxu1 %v2589_v17  ;;  %v2573_v33 = vor.u32 %v3440_v27, %v2572_v26  ;;  %v2449_v34 = vor.u32 %v3406_v28, %v2446_v30  ;;  %v2428_v35 = vld [vmem:[#allocation5 + $0x80] sm:$0xf]  ;;  %v3404_v36 = vld [vmem:[#allocation5 + $0x8c] sm:$0xf0] }
  0x27   :  { %567 = vmatpush.bf16.msra.mxu2 %v2465_v21  ;;  %v2556_v37 = vld [vmem:[#allocation5 + $0x180] sm:$0xf]  ;;  %v2577_v38 = vor.u32 %v3438_v31, %v2574_v32  ;;  %v3436_v39 = vld [vmem:[#allocation5 + $0x18c] sm:$0xf0]  ;;  %v3402_v40 = vld [vmem:[#allocation5 + $0x84] sm:$0xf]  ;;  %v2429_v44 = vor.u32 %v3404_v36, %v2428_v35 }
  0x28   :  { %580 = vmatpush.bf16.msra.mxu3 %v2593_v25  ;;  %v2430_v41 = vld [vmem:[#allocation5 + $0x90] sm:$0xf0]  ;;  %v3434_v42 = vld [vmem:[#allocation5 + $0x184] sm:$0xf]  ;;  %v2557_v45 = vor.u32 %v3436_v39, %v2556_v37  ;;  %v2412_v47 = vld [vmem:[#allocation5 + $0x60] sm:$0xf] }
  0x29   :  { %v2558_v43 = vld [vmem:[#allocation5 + $0x190] sm:$0xf0]  ;;  %542 = vmatpush.bf16.msra.mxu0 %v2445_v29  ;;  %v2433_v46 = vor.u32 %v3402_v40, %v2430_v41  ;;  %v3400_v48 = vld [vmem:[#allocation5 + $0x6c] sm:$0xf0]  ;;  %v2540_v49 = vld [vmem:[#allocation5 + $0x160] sm:$0xf] }
  0x2a   :  { %555 = vmatpush.bf16.msra.mxu1 %v2573_v33  ;;  %v2561_v50 = vor.u32 %v3434_v42, %v2558_v43  ;;  %v3432_v51 = vld [vmem:[#allocation5 + $0x16c] sm:$0xf0]  ;;  %v3398_v52 = vld [vmem:[#allocation5 + $0x64] sm:$0xf]  ;;  %v2414_v53 = vld [vmem:[#allocation5 + $0x70] sm:$0xf0]  ;;  %v2413_v56 = vor.u32 %v3400_v48, %v2412_v47 }
  0x2b   :  { %568 = vmatpush.bf16.msra.mxu2 %v2449_v34  ;;  %v3430_v54 = vld [vmem:[#allocation5 + $0x164] sm:$0xf]  ;;  %v2542_v55 = vld [vmem:[#allocation5 + $0x170] sm:$0xf0]  ;;  %v2541_v57 = vor.u32 %v3432_v51, %v2540_v49  ;;  %v2417_v58 = vor.u32 %v3398_v52, %v2414_v53  ;;  %v2396_v59 = vld [vmem:[#allocation5 + $0x40] sm:$0xf] }
  0x2c   :  { %581 = vmatpush.bf16.msra.mxu3 %v2577_v38  ;;  %v3396_v60 = vld [vmem:[#allocation5 + $0x4c] sm:$0xf0]  ;;  %v2524_v61 = vld [vmem:[#allocation5 + $0x140] sm:$0xf]  ;;  %v2545_v62 = vor.u32 %v3430_v54, %v2542_v55  ;;  %v3394_v0 = vld [vmem:[#allocation5 + $0x44] sm:$0xf] }
  0x2d   :  { %543 = vmatpush.bf16.msra.mxu0 %v2429_v44  ;;  %v3428_v63 = vld [vmem:[#allocation5 + $0x14c] sm:$0xf0]  ;;  %v2398_v1 = vld [vmem:[#allocation5 + $0x50] sm:$0xf0]  ;;  %v3426_v2 = vld [vmem:[#allocation5 + $0x144] sm:$0xf]  ;;  %v2397_v4 = vor.u32 %v3396_v60, %v2396_v59 }
  0x2e   :  { %556 = vmatpush.bf16.msra.mxu1 %v2557_v45  ;;  %v2526_v3 = vld [vmem:[#allocation5 + $0x150] sm:$0xf0]  ;;  %v2525_v5 = vor.u32 %v3428_v63, %v2524_v61  ;;  %v2401_v6 = vor.u32 %v3394_v0, %v2398_v1  ;;  %v2380_v7 = vld [vmem:[#allocation5 + $0x20] sm:$0xf]  ;;  %v3392_v8 = vld [vmem:[#allocation5 + $0x2c] sm:$0xf0] }
  0x2f   :  { %569 = vmatpush.bf16.msra.mxu2 %v2433_v46  ;;  %v2508_v9 = vld [vmem:[#allocation5 + $0x120] sm:$0xf]  ;;  %v2529_v10 = vor.u32 %v3426_v2, %v2526_v3  ;;  %v3424_v11 = vld [vmem:[#allocation5 + $0x12c] sm:$0xf0]  ;;  %v3390_v12 = vld [vmem:[#allocation5 + $0x24] sm:$0xf]  ;;  %v2381_v17 = vor.u32 %v3392_v8, %v2380_v7 }
  0x30   :  { %582 = vmatpush.bf16.msra.mxu3 %v2561_v50  ;;  %v2382_v13 = vld [vmem:[#allocation5 + $0x30] sm:$0xf0]  ;;  %v3422_v14 = vld [vmem:[#allocation5 + $0x124] sm:$0xf]  ;;  %v2364_v16 = vld [vmem:[#allocation5] sm:$0xf]  ;;  %v2509_v21 = vor.u32 %v3424_v11, %v2508_v9 }
  0x31   :  { %544 = vmatpush.bf16.msra.mxu0 %v2413_v56  ;;  %v2510_v15 = vld [vmem:[#allocation5 + $0x130] sm:$0xf0]  ;;  %v3388_v18 = vld [vmem:[#allocation5 + $0xc] sm:$0xf0]  ;;  %v2492_v19 = vld [vmem:[#allocation5 + $0x100] sm:$0xf]  ;;  %v2385_v22 = vor.u32 %v3390_v12, %v2382_v13 }
  0x32   :  { %557 = vmatpush.bf16.msra.mxu1 %v2541_v57  ;;  %v3420_v20 = vld [vmem:[#allocation5 + $0x10c] sm:$0xf0]  ;;  %v3386_v23 = vld [vmem:[#allocation5 + $0x4] sm:$0xf]  ;;  %v2366_v24 = vld [vmem:[#allocation5 + $0x10] sm:$0xf0]  ;;  %v2513_v26 = vor.u32 %v3422_v14, %v2510_v15  ;;  %v2365_v32 = vor.u32 %v3388_v18, %v2364_v16 }
  0x33   :  { %570 = vmatpush.bf16.msra.mxu2 %v2417_v58  ;;  %v137_v25 = vld [vmem:[#allocation2] sm:$0xf]  ;;  %v3418_v27 = vld [vmem:[#allocation5 + $0x104] sm:$0xf]  ;;  %v2494_v28 = vld [vmem:[#allocation5 + $0x110] sm:$0xf0]  ;;  %v2493_v36 = vor.u32 %v3420_v20, %v2492_v19  ;;  %v2369_v37 = vor.u32 %v3386_v23, %v2366_v24 }
  0x34   :  { %583 = vmatpush.bf16.msra.mxu3 %v2545_v62  ;;  %139 = vst [vmem:[#allocation1] ss:$4 sm:$0xff] %v137_v25  ;;  %v2484_v29 = vld [vmem:[#allocation5 + $0xe8] sm:$0xf]  ;;  %v3417_v30 = vld [vmem:[#allocation5 + $0xf4] sm:$0xf0]  ;;  %v2497_v40 = vor.u32 %v3418_v27, %v2494_v28 }
  0x35   :  { %545 = vmatpush.bf16.msra.mxu0 %v2397_v4  ;;  %v2612_v31 = vld [vmem:[#allocation5 + $0x1e8] sm:$0xf]  ;;  %v3449_v33 = vld [vmem:[#allocation5 + $0x1f4] sm:$0xf0]  ;;  %v3415_v34 = vld [vmem:[#allocation5 + $0xec] sm:$0xf]  ;;  %v2485_v41 = vor.u32 %v3417_v30, %v2484_v29 }
  0x36   :  { %558 = vmatpush.bf16.msra.mxu1 %v2525_v5  ;;  %v2486_v35 = vld [vmem:[#allocation5 + $0xf8] sm:$0xf0]  ;;  %v3447_v38 = vld [vmem:[#allocation5 + $0x1ec] sm:$0xf]  ;;  %v2468_v42 = vld [vmem:[#allocation5 + $0xc8] sm:$0xf]  ;;  %v2613_v44 = vor.u32 %v3449_v33, %v2612_v31 }
  0x37   :  { %571 = vmatpush.bf16.msra.mxu2 %v2401_v6  ;;  %v2614_v39 = vld [vmem:[#allocation5 + $0x1f8] sm:$0xf0]  ;;  %v3413_v43 = vld [vmem:[#allocation5 + $0xd4] sm:$0xf0]  ;;  %v2489_v45 = vor.u32 %v3415_v34, %v2486_v35  ;;  %v2596_v46 = vld [vmem:[#allocation5 + $0x1c8] sm:$0xf] }
  0x38   :  { %584 = vmatpush.bf16.msra.mxu3 %v2529_v10  ;;  %v3445_v47 = vld [vmem:[#allocation5 + $0x1d4] sm:$0xf0]  ;;  %v3411_v48 = vld [vmem:[#allocation5 + $0xcc] sm:$0xf]  ;;  %v2617_v49 = vor.u32 %v3447_v38, %v2614_v39  ;;  %v2470_v50 = vld [vmem:[#allocation5 + $0xd8] sm:$0xf0]  ;;  %v2469_v57 = vor.u32 %v3413_v43, %v2468_v42 }
  0x39   :  { %546 = vmatpush.bf16.msra.mxu0 %v2381_v17  ;;  %v3443_v51 = vld [vmem:[#allocation5 + $0x1cc] sm:$0xf]  ;;  %v2598_v52 = vld [vmem:[#allocation5 + $0x1d8] sm:$0xf0]  ;;  %v2597_v58 = vor.u32 %v3445_v47, %v2596_v46  ;;  %v2473_v59 = vor.u32 %v3411_v48, %v2470_v50  ;;  %v2452_v60 = vld [vmem:[#allocation5 + $0xa8] sm:$0xf] }
  0x3a   :  { %559 = vmatpush.bf16.msra.mxu1 %v2509_v21  ;;  %v3409_v61 = vld [vmem:[#allocation5 + $0xb4] sm:$0xf0]  ;;  %v2580_v62 = vld [vmem:[#allocation5 + $0x1a8] sm:$0xf]  ;;  %v2601_v63 = vor.u32 %v3443_v51, %v2598_v52  ;;  %v3407_v1 = vld [vmem:[#allocation5 + $0xac] sm:$0xf] }
  0x3b   :  { %572 = vmatpush.bf16.msra.mxu2 %v2385_v22  ;;  %v140_v53 = vld.sshfl [vmem:[#allocation1] sm:$0xff pattern:$0x73625140]  ;;  %v141_v54 = vld.sshfl [vmem:[#allocation1 + $0x8] sm:$0xff pattern:$0x73625140]  ;;  %v2453_v5 = vor.u32 %v3409_v61, %v2452_v60 }
  0x3c   :  { %585 = vmatpush.bf16.msra.mxu3 %v2513_v26  ;;  %v3954_v55 = vpack.c.bf16 %v140_v53, %v140_v53  ;;  %v3956_v56 = vpack.c.bf16 %v141_v54, %v141_v54  ;;  %v3441_v0 = vld [vmem:[#allocation5 + $0x1b4] sm:$0xf0]  ;;  %v2454_v2 = vld [vmem:[#allocation5 + $0xb8] sm:$0xf0]  ;;  %v3439_v3 = vld [vmem:[#allocation5 + $0x1ac] sm:$0xf] }
  0x3d   :  { %547 = vmatpush.bf16.msra.mxu0 %v2365_v32  ;;  %v2582_v4 = vld [vmem:[#allocation5 + $0x1b8] sm:$0xf0]  ;;  %v2581_v6 = vor.u32 %v3441_v0, %v2580_v62  ;;  %v2457_v7 = vor.u32 %v3407_v1, %v2454_v2  ;;  %v2436_v8 = vld [vmem:[#allocation5 + $0x88] sm:$0xf]  ;;  %v3405_v9 = vld [vmem:[#allocation5 + $0x94] sm:$0xf0] }
  0x3e   :  { %560 = vmatpush.bf16.msra.mxu1 %v2493_v36  ;;  %v2564_v10 = vld [vmem:[#allocation5 + $0x188] sm:$0xf]  ;;  %v2585_v11 = vor.u32 %v3439_v3, %v2582_v4  ;;  %v3437_v12 = vld [vmem:[#allocation5 + $0x194] sm:$0xf0]  ;;  %v3403_v13 = vld [vmem:[#allocation5 + $0x8c] sm:$0xf]  ;;  %v2437_v17 = vor.u32 %v3405_v9, %v2436_v8 }
  0x3f   :  { %573 = vmatpush.bf16.msra.mxu2 %v2369_v37  ;;  %v2438_v14 = vld [vmem:[#allocation5 + $0x98] sm:$0xf0]  ;;  %v3435_v15 = vld [vmem:[#allocation5 + $0x18c] sm:$0xf]  ;;  %v2565_v18 = vor.u32 %v3437_v12, %v2564_v10  ;;  %v2420_v20 = vld [vmem:[#allocation5 + $0x68] sm:$0xf] }
  0x40   :  { %586 = vmatpush.bf16.msra.mxu3 %v2497_v40  ;;  %548 = vmatmul.bf16.vlgmr.msra.gmra.mxu0 %v3954_v55  ;;  %v2566_v16 = vld [vmem:[#allocation5 + $0x198] sm:$0xf0]  ;;  %v2441_v19 = vor.u32 %v3403_v13, %v2438_v14  ;;  %v3401_v21 = vld [vmem:[#allocation5 + $0x74] sm:$0xf0]  ;;  %v2548_v22 = vld [vmem:[#allocation5 + $0x168] sm:$0xf] }
  0x41   :  { %592 = vmatpush.bf16.msrb.mxu0 %v2485_v41  ;;  %561 = vmatmul.bf16.vlgmr.msra.gmra.mxu1 %v3956_v56  ;;  %v2569_v23 = vor.u32 %v3435_v15, %v2566_v16  ;;  %v3433_v24 = vld [vmem:[#allocation5 + $0x174] sm:$0xf0]  ;;  %v3399_v25 = vld [vmem:[#allocation5 + $0x6c] sm:$0xf]  ;;  %v2422_v26 = vld [vmem:[#allocation5 + $0x78] sm:$0xf0]  ;;  %v2421_v29 = vor.u32 %v3401_v21, %v2420_v20 }
  0x42   :  { %605 = vmatpush.bf16.msrb.mxu1 %v2613_v44  ;;  %574 = vmatmul.bf16.vlgmr.msra.gmra.mxu2 %v3954_v55  ;;  %v3431_v27 = vld [vmem:[#allocation5 + $0x16c] sm:$0xf]  ;;  %v2550_v28 = vld [vmem:[#allocation5 + $0x178] sm:$0xf0]  ;;  %v2549_v30 = vor.u32 %v3433_v24, %v2548_v22  ;;  %v2425_v31 = vor.u32 %v3399_v25, %v2422_v26  ;;  %v2404_v32 = vld [vmem:[#allocation5 + $0x48] sm:$0xf] }
  0x43   :  { %618 = vmatpush.bf16.msrb.mxu2 %v2489_v45  ;;  %587 = vmatmul.bf16.vlgmr.msra.gmra.mxu3 %v3956_v56  ;;  %v3397_v33 = vld [vmem:[#allocation5 + $0x54] sm:$0xf0]  ;;  %v2532_v34 = vld [vmem:[#allocation5 + $0x148] sm:$0xf]  ;;  %v2553_v35 = vor.u32 %v3431_v27, %v2550_v28  ;;  %v3395_v37 = vld [vmem:[#allocation5 + $0x4c] sm:$0xf] }
  0x44   :  { %631 = vmatpush.bf16.msrb.mxu3 %v2617_v49  ;;  %v3429_v36 = vld [vmem:[#allocation5 + $0x154] sm:$0xf0]  ;;  %v2406_v38 = vld [vmem:[#allocation5 + $0x58] sm:$0xf0]  ;;  %v3427_v39 = vld [vmem:[#allocation5 + $0x14c] sm:$0xf]  ;;  %v2405_v41 = vor.u32 %v3397_v33, %v2404_v32 }
  0x45   :  { %593 = vmatpush.bf16.msrb.mxu0 %v2469_v57  ;;  %v2534_v40 = vld [vmem:[#allocation5 + $0x158] sm:$0xf0]  ;;  %v2533_v42 = vor.u32 %v3429_v36, %v2532_v34  ;;  %v2409_v43 = vor.u32 %v3395_v37, %v2406_v38  ;;  %v2388_v44 = vld [vmem:[#allocation5 + $0x28] sm:$0xf]  ;;  %v3393_v45 = vld [vmem:[#allocation5 + $0x34] sm:$0xf0] }
  0x46   :  { %606 = vmatpush.bf16.msrb.mxu1 %v2597_v58  ;;  %v2516_v46 = vld [vmem:[#allocation5 + $0x128] sm:$0xf]  ;;  %v2537_v47 = vor.u32 %v3427_v39, %v2534_v40  ;;  %v3425_v48 = vld [vmem:[#allocation5 + $0x134] sm:$0xf0]  ;;  %v3391_v49 = vld [vmem:[#allocation5 + $0x2c] sm:$0xf]  ;;  %v2389_v53 = vor.u32 %v3393_v45, %v2388_v44 }
  0x47   :  { %619 = vmatpush.bf16.msrb.mxu2 %v2473_v59  ;;  %v2390_v50 = vld [vmem:[#allocation5 + $0x38] sm:$0xf0]  ;;  %v3423_v51 = vld [vmem:[#allocation5 + $0x12c] sm:$0xf]  ;;  %v2372_v54 = vld [vmem:[#allocation5 + $0x8] sm:$0xf]  ;;  %v2517_v57 = vor.u32 %v3425_v48, %v2516_v46 }
  0x48   :  { %632 = vmatpush.bf16.msrb.mxu3 %v2601_v63  ;;  %v2518_v52 = vld [vmem:[#allocation5 + $0x138] sm:$0xf0]  ;;  %v2393_v58 = vor.u32 %v3391_v49, %v2390_v50  ;;  %v3389_v59 = vld [vmem:[#allocation5 + $0x14] sm:$0xf0]  ;;  %v2500_v60 = vld [vmem:[#allocation5 + $0x108] sm:$0xf] }
  0x49   :  { %594 = vmatpush.bf16.msrb.mxu0 %v2453_v5  ;;  %v3421_v61 = vld [vmem:[#allocation5 + $0x114] sm:$0xf0]  ;;  %v2521_v62 = vor.u32 %v3423_v51, %v2518_v52  ;;  %v3387_v63 = vld [vmem:[#allocation5 + $0xc] sm:$0xf]  ;;  %v2374_v0 = vld [vmem:[#allocation5 + $0x18] sm:$0xf0]  ;;  %v2373_v5 = vor.u32 %v3389_v59, %v2372_v54 }
  0x4a   :  { %607 = vmatpush.bf16.msrb.mxu1 %v2581_v6  ;;  %v3419_v1 = vld [vmem:[#allocation5 + $0x10c] sm:$0xf]  ;;  %v2502_v2 = vld [vmem:[#allocation5 + $0x118] sm:$0xf0]  ;;  %v2732_v3 = vld [vmem:[#allocation8 + $0xe0] sm:$0xf]  ;;  %v2501_v8 = vor.u32 %v3421_v61, %v2500_v60  ;;  %v2377_v9 = vor.u32 %v3387_v63, %v2374_v0 }
  0x4b   :  { %620 = vmatpush.bf16.msrb.mxu2 %v2457_v7  ;;  %v3480_v4 = vld [vmem:[#allocation8 + $0xec] sm:$0xf0]  ;;  %v2860_v6 = vld [vmem:[#allocation8 + $0x1e0] sm:$0xf]  ;;  %v2505_v10 = vor.u32 %v3419_v1, %v2502_v2  ;;  %vm1646_vm4 = vcmask 1041408   ;;  %vm1797_vm11 = vcmask 1040384  }
  0x4c   :  { %633 = vmatpush.bf16.msrb.mxu3 %v2585_v11  ;;  %v3512_v7 = vld [vmem:[#allocation8 + $0x1ec] sm:$0xf0]  ;;  %v2733_v11 = vor.u32 %v3480_v4, %v2732_v3  ;;  %v2988_v12 = vld [vmem:[#allocation8 + $0x2e0] sm:$0xf]  ;;  %s3877_s28 = smov [#allocation14]   ;;  %s2349_s3 = sshll.u32 %s4181_s10, 4  ;;  %s2350_s3 = int_to_ptr.hbm [resolvable:$true] %s2349_s3 }
  0x4d   :  { %595 = vmatpush.bf16.msrb.mxu0 %v2437_v17  ;;  %v3544_v13 = vld [vmem:[#allocation8 + $0x2ec] sm:$0xf0]  ;;  %v2716_v14 = vld [vmem:[#allocation8 + $0xc0] sm:$0xf]  ;;  %v2861_v16 = vor.u32 %v3512_v7, %v2860_v6  ;;  %s2347_s29 = sshll.u32 %s3877_s28, 4  ;;  %s2348_s29 = int_to_ptr.vmem [resolvable:$true] %s2347_s29 }
  0x4e   :  { %608 = vmatpush.bf16.msrb.mxu1 %v2565_v18  ;;  %v3476_v15 = vld [vmem:[#allocation8 + $0xcc] sm:$0xf0]  ;;  %v2844_v17 = vld [vmem:[#allocation8 + $0x1c0] sm:$0xf] }
  0x4f   :  { %621 = vmatpush.bf16.msrb.mxu2 %v2441_v19  ;;  %v3508_v18 = vld [vmem:[#allocation8 + $0x1cc] sm:$0xf0]  ;;  %v2989_v19 = vor.u32 %v3544_v13, %v2988_v12  ;;  %v2717_v20 = vor.u32 %v3476_v15, %v2716_v14  ;;  %v2972_v21 = vld [vmem:[#allocation8 + $0x2c0] sm:$0xf]  ;;  %v3478_v13 = vld [vmem:[#allocation8 + $0xe4] sm:$0xf] }
  0x50   :  { %634 = vmatpush.bf16.msrb.mxu3 %v2569_v23  ;;  %v3540_v22 = vld [vmem:[#allocation8 + $0x2cc] sm:$0xf0]  ;;  %v2700_v23 = vld [vmem:[#allocation8 + $0xa0] sm:$0xf]  ;;  %v2845_v25 = vor.u32 %v3508_v18, %v2844_v17  ;;  %v2734_v15 = vld [vmem:[#allocation8 + $0xf0] sm:$0xf0] }
  0x51   :  { %596 = vmatpush.bf16.msrb.mxu0 %v2421_v29  ;;  %v3472_v24 = vld [vmem:[#allocation8 + $0xac] sm:$0xf0]  ;;  %v3116_v26 = vld [vmem:[#allocation8 + $0x3e0] sm:$0xf]  ;;  %v3510_v18 = vld [vmem:[#allocation8 + $0x1e4] sm:$0xf] }
  0x52   :  { %609 = vmatpush.bf16.msrb.mxu1 %v2549_v30  ;;  %v2828_v27 = vld [vmem:[#allocation8 + $0x1a0] sm:$0xf]  ;;  %v3504_v28 = vld [vmem:[#allocation8 + $0x1ac] sm:$0xf0]  ;;  %v2973_v30 = vor.u32 %v3540_v22, %v2972_v21  ;;  %v2701_v32 = vor.u32 %v3472_v24, %v2700_v23  ;;  %v2737_v21 = vor.u32 %v3478_v13, %v2734_v15  ;;  %v3474_v23 = vld [vmem:[#allocation8 + $0xc4] sm:$0xf] }
  0x53   :  { %622 = vmatpush.bf16.msrb.mxu2 %v2425_v31  ;;  %v3576_v29 = vld [vmem:[#allocation8 + $0x3ec] sm:$0xf0]  ;;  %v2684_v33 = vld [vmem:[#allocation8 + $0x80] sm:$0xf]  ;;  %v2829_v37 = vor.u32 %v3504_v28, %v2828_v27  ;;  %v2718_v24 = vld [vmem:[#allocation8 + $0xd0] sm:$0xf0] }
  0x54   :  { %635 = vmatpush.bf16.msrb.mxu3 %v2553_v35  ;;  %v3117_v31 = vor.u32 %v3576_v29, %v3116_v26  ;;  %v2956_v34 = vld [vmem:[#allocation8 + $0x2a0] sm:$0xf]  ;;  %v3536_v35 = vld [vmem:[#allocation8 + $0x2ac] sm:$0xf0]  ;;  %v3506_v26 = vld [vmem:[#allocation8 + $0x1c4] sm:$0xf]  ;;  %v2721_v28 = vor.u32 %v3474_v23, %v2718_v24 }
  0x55   :  { %597 = vmatpush.bf16.msrb.mxu0 %v2405_v41  ;;  %v3468_v36 = vld [vmem:[#allocation8 + $0x8c] sm:$0xf0]  ;;  %v3100_v38 = vld [vmem:[#allocation8 + $0x3c0] sm:$0xf]  ;;  %v2846_v27 = vld [vmem:[#allocation8 + $0x1d0] sm:$0xf0] }
  0x56   :  { %610 = vmatpush.bf16.msrb.mxu1 %v2533_v42  ;;  %v3572_v39 = vld [vmem:[#allocation8 + $0x3cc] sm:$0xf0]  ;;  %v2957_v42 = vor.u32 %v3536_v35, %v2956_v34  ;;  %v2940_v44 = vld [vmem:[#allocation8 + $0x280] sm:$0xf]  ;;  %v3470_v29 = vld [vmem:[#allocation8 + $0xa4] sm:$0xf] }
  0x57   :  { %623 = vmatpush.bf16.msrb.mxu2 %v2409_v43  ;;  %v3500_v40 = vld [vmem:[#allocation8 + $0x18c] sm:$0xf0]  ;;  %v3101_v41 = vor.u32 %v3572_v39, %v3100_v38  ;;  %v2668_v43 = vld [vmem:[#allocation8 + $0x60] sm:$0xf]  ;;  %v3466_v35 = vld [vmem:[#allocation8 + $0x84] sm:$0xf] }
  0x58   :  { %636 = vmatpush.bf16.msrb.mxu3 %v2537_v47  ;;  %v3532_v45 = vld [vmem:[#allocation8 + $0x28c] sm:$0xf0]  ;;  %v3084_v48 = vld [vmem:[#allocation8 + $0x3a0] sm:$0xf]  ;;  %v3498_v38 = vld [vmem:[#allocation8 + $0x184] sm:$0xf] }
  0x59   :  { %598 = vmatpush.bf16.msrb.mxu0 %v2389_v53  ;;  %v3464_v46 = vld [vmem:[#allocation8 + $0x6c] sm:$0xf0]  ;;  %v2796_v50 = vld [vmem:[#allocation8 + $0x160] sm:$0xf]  ;;  %v2941_v53 = vor.u32 %v3532_v45, %v2940_v44  ;;  %v2814_v39 = vld [vmem:[#allocation8 + $0x190] sm:$0xf0] }
  0x5a   :  { %611 = vmatpush.bf16.msrb.mxu1 %v2517_v57  ;;  %v3568_v49 = vld [vmem:[#allocation8 + $0x3ac] sm:$0xf0]  ;;  %v2669_v54 = vor.u32 %v3464_v46, %v2668_v43  ;;  %v2652_v57 = vld [vmem:[#allocation8 + $0x40] sm:$0xf]  ;;  %v3458_v45 = vld [vmem:[#allocation8 + $0x44] sm:$0xf] }
  0x5b   :  { %624 = vmatpush.bf16.msrb.mxu2 %v2393_v58  ;;  %v3496_v51 = vld [vmem:[#allocation8 + $0x16c] sm:$0xf0]  ;;  %v3085_v52 = vor.u32 %v3568_v49, %v3084_v48  ;;  %v2924_v58 = vld [vmem:[#allocation8 + $0x260] sm:$0xf] }
  0x5c   :  { %637 = vmatpush.bf16.msrb.mxu3 %v2521_v62  ;;  %v3528_v59 = vld [vmem:[#allocation8 + $0x26c] sm:$0xf0]  ;;  %v2797_v61 = vor.u32 %v3496_v51, %v2796_v50  ;;  %v3068_v62 = vld [vmem:[#allocation8 + $0x380] sm:$0xf]  ;;  %v3494_v51 = vld [vmem:[#allocation8 + $0x164] sm:$0xf] }
  0x5d   :  { %599 = vmatpush.bf16.msrb.mxu0 %v2373_v5  ;;  %v3460_v60 = vld [vmem:[#allocation8 + $0x4c] sm:$0xf0]  ;;  %v2780_v0 = vld [vmem:[#allocation8 + $0x140] sm:$0xf]  ;;  %v2925_v3 = vor.u32 %v3528_v59, %v2924_v58  ;;  %v3454_v59 = vld [vmem:[#allocation8 + $0x24] sm:$0xf] }
  0x5e   :  { %612 = vmatpush.bf16.msrb.mxu1 %v2501_v8  ;;  %v3564_v63 = vld [vmem:[#allocation8 + $0x38c] sm:$0xf0]  ;;  %v2653_v4 = vor.u32 %v3460_v60, %v2652_v57  ;;  %v2636_v5 = vld [vmem:[#allocation8 + $0x20] sm:$0xf] }
  0x5f   :  { %625 = vmatpush.bf16.msrb.mxu2 %v2377_v9  ;;  %v3492_v1 = vld [vmem:[#allocation8 + $0x14c] sm:$0xf0]  ;;  %v3069_v2 = vor.u32 %v3564_v63, %v3068_v62  ;;  %v2764_v8 = vld [vmem:[#allocation8 + $0x120] sm:$0xf] }
  0x60   :  { %638 = vmatpush.bf16.msrb.mxu3 %v2505_v10  ;;  %600 = vmatmul.bf16.vlgmr.msrb.gmra.mxu0 %v3954_v55  ;;  %v3456_v6 = vld [vmem:[#allocation8 + $0x2c] sm:$0xf0]  ;;  %v2781_v7 = vor.u32 %v3492_v1, %v2780_v0  ;;  %v2908_v43 = vld [vmem:[#allocation8 + $0x240] sm:$0xf]  ;;  %v3490_v1 = vld [vmem:[#allocation8 + $0x144] sm:$0xf] }
  0x61   :  { %1438 = vmatpush.bf16.msra.mxu0 %v2733_v11  ;;  %613 = vmatmul.bf16.vlgmr.msrb.gmra.mxu1 %v3956_v56  ;;  %v3488_v9 = vld [vmem:[#allocation8 + $0x12c] sm:$0xf0]  ;;  %v2637_v10 = vor.u32 %v3456_v6, %v2636_v5  ;;  %v2620_v11 = vld [vmem:[#allocation8] sm:$0xf] }
  0x62   :  { %1451 = vmatpush.bf16.msra.mxu1 %v2861_v16  ;;  %626 = vmatmul.bf16.vlgmr.msrb.gmra.mxu2 %v3954_v55  ;;  %v2812_v55 = vld [vmem:[#allocation8 + $0x180] sm:$0xf]  ;;  %v3452_v12 = vld [vmem:[#allocation8 + $0xc] sm:$0xf0]  ;;  %v2765_v14 = vor.u32 %v3488_v9, %v2764_v8  ;;  %v2622_v9 = vld [vmem:[#allocation8 + $0x10] sm:$0xf0] }
  0x63   :  { %639 = vmatmul.bf16.vlgmr.msrb.gmra.mxu3 %v3956_v56  ;;  %1464 = vmatpush.bf16.msra.mxu2 %v2989_v19  ;;  %v2685_v56 = vor.u32 %v3468_v36, %v2684_v33  ;;  %v2813_v47 = vor.u32 %v3500_v40, %v2812_v55  ;;  %v2748_v16 = vld [vmem:[#allocation8 + $0x100] sm:$0xf]  ;;  %v3484_v17 = vld [vmem:[#allocation8 + $0x10c] sm:$0xf0]  ;;  %v2862_v19 = vld [vmem:[#allocation8 + $0x1f0] sm:$0xf0] }
  0x64   :  { %1477 = vmatpush.bf16.msra.mxu3 %v3117_v31  ;;  %v2749_v22 = vor.u32 %v3484_v17, %v2748_v16  ;;  %v2849_v31 = vor.u32 %v3506_v26, %v2846_v27  ;;  %v2830_v33 = vld [vmem:[#allocation8 + $0x1b0] sm:$0xf0]  ;;  %v3462_v40 = vld [vmem:[#allocation8 + $0x64] sm:$0xf]  ;;  %v3524_v44 = vld [vmem:[#allocation8 + $0x24c] sm:$0xf0] }
  0x65   :  { %1439 = vmatpush.bf16.msra.mxu0 %v2717_v20  ;;  %v2621_v20 = vor.u32 %v3452_v12, %v2620_v11  ;;  %v2686_v36 = vld [vmem:[#allocation8 + $0x90] sm:$0xf0]  ;;  %v2909_v46 = vor.u32 %v3524_v44, %v2908_v43  ;;  %v3052_v49 = vld [vmem:[#allocation8 + $0x360] sm:$0xf]  ;;  %v3560_v50 = vld [vmem:[#allocation8 + $0x36c] sm:$0xf0] }
  0x66   :  { %1452 = vmatpush.bf16.msra.mxu1 %v2845_v25  ;;  %v2865_v25 = vor.u32 %v3510_v18, %v2862_v19  ;;  %v2689_v55 = vor.u32 %v3466_v35, %v2686_v36  ;;  %v2892_v57 = vld [vmem:[#allocation8 + $0x220] sm:$0xf]  ;;  %v3520_v58 = vld [vmem:[#allocation8 + $0x22c] sm:$0xf0]  ;;  %v2990_v11 = vld [vmem:[#allocation8 + $0x2f0] sm:$0xf0] }
  0x67   :  { %1465 = vmatpush.bf16.msra.mxu2 %v2973_v30  ;;  %v2702_v30 = vld [vmem:[#allocation8 + $0xb0] sm:$0xf0]  ;;  %v2893_v60 = vor.u32 %v3520_v58, %v2892_v57  ;;  %v3036_v63 = vld [vmem:[#allocation8 + $0x340] sm:$0xf]  ;;  %v3556_v0 = vld [vmem:[#allocation8 + $0x34c] sm:$0xf0] }
  0x68   :  { %1478 = vmatpush.bf16.msra.mxu3 %v3101_v41  ;;  %v2705_v34 = vor.u32 %v3470_v29, %v2702_v30  ;;  %v2670_v41 = vld [vmem:[#allocation8 + $0x70] sm:$0xf0]  ;;  %v2876_v5 = vld [vmem:[#allocation8 + $0x200] sm:$0xf]  ;;  %v3516_v6 = vld [vmem:[#allocation8 + $0x20c] sm:$0xf0] }
  0x69   :  { %1440 = vmatpush.bf16.msra.mxu0 %v2701_v32  ;;  %v3502_v32 = vld [vmem:[#allocation8 + $0x1a4] sm:$0xf]  ;;  %v2877_v8 = vor.u32 %v3516_v6, %v2876_v5  ;;  %v3552_v15 = vld [vmem:[#allocation8 + $0x32c] sm:$0xf0]  ;;  %v2766_v17 = vld [vmem:[#allocation8 + $0x130] sm:$0xf0] }
  0x6a   :  { %1453 = vmatpush.bf16.msra.mxu1 %v2829_v37  ;;  %v2833_v37 = vor.u32 %v3502_v32, %v2830_v33  ;;  %v3486_v16 = vld [vmem:[#allocation8 + $0x124] sm:$0xf]  ;;  %v3004_v23 = vld [vmem:[#allocation8 + $0x300] sm:$0xf]  ;;  %v3548_v24 = vld [vmem:[#allocation8 + $0x30c] sm:$0xf0] }
  0x6b   :  { %1466 = vmatpush.bf16.msra.mxu2 %v2957_v42  ;;  %v2817_v42 = vor.u32 %v3498_v38, %v2814_v39  ;;  %v2769_v19 = vor.u32 %v3486_v16, %v2766_v17  ;;  %v3482_v26 = vld [vmem:[#allocation8 + $0x104] sm:$0xf]  ;;  %v2750_v27 = vld [vmem:[#allocation8 + $0x110] sm:$0xf0]  ;;  %v3966_v44 = vld [vmem:[#allocation7] sm:$0xf] }
  0x6c   :  { %1479 = vmatpush.bf16.msra.mxu3 %v3085_v52  ;;  %v3053_v52 = vor.u32 %v3560_v50, %v3052_v49  ;;  %v2753_v29 = vor.u32 %v3482_v26, %v2750_v27  ;;  %v3118_v30 = vld [vmem:[#allocation8 + $0x3f0] sm:$0xf0]  ;;  %v3534_v32 = vld [vmem:[#allocation8 + $0x2a4] sm:$0xf]  ;;  %v212_v49 = vperm.slane %v3966_v44, 0 }
  0x6d   :  { %1441 = vmatpush.bf16.msra.mxu0 %v2685_v56  ;;  %v2673_v56 = vor.u32 %v3462_v40, %v2670_v41  ;;  %v2958_v33 = vld [vmem:[#allocation8 + $0x2b0] sm:$0xf0]  ;;  %v3570_v35 = vld [vmem:[#allocation8 + $0x3c4] sm:$0xf]  ;;  %v3481_v5 = vld [vmem:[#allocation8 + $0xf4] sm:$0xf0] }
  0x6e   :  { %1454 = vmatpush.bf16.msra.mxu1 %v2813_v47  ;;  %v2654_v47 = vld [vmem:[#allocation8 + $0x50] sm:$0xf0]  ;;  %v3530_v38 = vld [vmem:[#allocation8 + $0x284] sm:$0xf]  ;;  %v3513_v26 = vld [vmem:[#allocation8 + $0x1f4] sm:$0xf0] }
  0x6f   :  { %1467 = vmatpush.bf16.msra.mxu2 %v2941_v53  ;;  %v2657_v48 = vor.u32 %v3458_v45, %v2654_v47  ;;  %v2798_v53 = vld [vmem:[#allocation8 + $0x170] sm:$0xf0]  ;;  %v3566_v40 = vld [vmem:[#allocation8 + $0x3a4] sm:$0xf] }
  0x70   :  { %1480 = vmatpush.bf16.msra.mxu3 %v3069_v2  ;;  %v3037_v2 = vor.u32 %v3556_v0, %v3036_v63  ;;  %v3102_v36 = vld [vmem:[#allocation8 + $0x3d0] sm:$0xf0]  ;;  %v3522_v50 = vld [vmem:[#allocation8 + $0x244] sm:$0xf] }
  0x71   :  { %1442 = vmatpush.bf16.msra.mxu0 %v2669_v54  ;;  %v2801_v54 = vor.u32 %v3494_v51, %v2798_v53  ;;  %v2942_v39 = vld [vmem:[#allocation8 + $0x290] sm:$0xf0]  ;;  %v3558_v53 = vld [vmem:[#allocation8 + $0x364] sm:$0xf] }
  0x72   :  { %1455 = vmatpush.bf16.msra.mxu1 %v2797_v61  ;;  %v2638_v61 = vld [vmem:[#allocation8 + $0x30] sm:$0xf0] }
  0x73   :  { %1468 = vmatpush.bf16.msra.mxu2 %v2925_v3  ;;  %v2641_v62 = vor.u32 %v3454_v59, %v2638_v61  ;;  %v2782_v3 = vld [vmem:[#allocation8 + $0x150] sm:$0xf0]  ;;  %v3518_v61 = vld [vmem:[#allocation8 + $0x224] sm:$0xf] }
  0x74   :  { %1481 = vmatpush.bf16.msra.mxu3 %v3053_v52  ;;  %v3086_v41 = vld [vmem:[#allocation8 + $0x3b0] sm:$0xf0] }
  0x75   :  { %1443 = vmatpush.bf16.msra.mxu0 %v2653_v4  ;;  %v2785_v4 = vor.u32 %v3490_v1, %v2782_v3  ;;  %v2926_v43 = vld [vmem:[#allocation8 + $0x270] sm:$0xf0]  ;;  %v3554_v1 = vld [vmem:[#allocation8 + $0x344] sm:$0xf]  ;;  %v213_v3 = vperm.slane %v3966_v44, 1 }
  0x76   :  { %1456 = vmatpush.bf16.msra.mxu1 %v2781_v7  ;;  %v3450_v7 = vld [vmem:[#allocation8 + $0x4] sm:$0xf]  ;;  %v3070_v47 = vld [vmem:[#allocation8 + $0x390] sm:$0xf0] }
  0x77   :  { %1469 = vmatpush.bf16.msra.mxu2 %v2909_v46  ;;  %v2625_v12 = vor.u32 %v3450_v7, %v2622_v9  ;;  %v3562_v46 = vld [vmem:[#allocation8 + $0x384] sm:$0xf]  ;;  %v2910_v51 = vld [vmem:[#allocation8 + $0x250] sm:$0xf0] }
  0x78   :  { %1482 = vmatpush.bf16.msra.mxu3 %v3037_v2  ;;  %v2913_v52 = vor.u32 %v3522_v50, %v2910_v51  ;;  %v3038_v2 = vld [vmem:[#allocation8 + $0x350] sm:$0xf0]  ;;  %v2820_v51 = vld [vmem:[#allocation8 + $0x188] sm:$0xf] }
  0x79   :  { %1444 = vmatpush.bf16.msra.mxu0 %v2637_v10  ;;  %v3542_v10 = vld [vmem:[#allocation8 + $0x2e4] sm:$0xf]  ;;  %v3041_v6 = vor.u32 %v3554_v1, %v3038_v2  ;;  %v2878_v9 = vld [vmem:[#allocation8 + $0x210] sm:$0xf0] }
  0x7a   :  { %1457 = vmatpush.bf16.msra.mxu1 %v2765_v14  ;;  %v2993_v13 = vor.u32 %v3542_v10, %v2990_v11  ;;  %v3020_v14 = vld [vmem:[#allocation8 + $0x320] sm:$0xf] }
  0x7b   :  { %1470 = vmatpush.bf16.msra.mxu2 %v2893_v60  ;;  %v3021_v18 = vor.u32 %v3552_v15, %v3020_v14 }
  0x7d   :  { %1445 = vmatpush.bf16.msra.mxu0 %v2621_v20  ;;  %v3538_v20 = vld [vmem:[#allocation8 + $0x2c4] sm:$0xf]  ;;  %1483 = vmatpush.bf16.msra.mxu3 %v3021_v18  ;;  %v3477_v18 = vld [vmem:[#allocation8 + $0xd4] sm:$0xf0] }
  0x7e   :  { %1458 = vmatpush.bf16.msra.mxu1 %v2749_v22 }
  0x7f   :  { %1471 = vmatpush.bf16.msra.mxu2 %v2877_v8  ;;  %v3514_v8 = vld [vmem:[#allocation8 + $0x204] sm:$0xf] }
  0x80   :  { %v2881_v14 = vor.u32 %v3514_v8, %v2878_v9  ;;  %v2628_v9 = vld [vmem:[#allocation8 + $0x8] sm:$0xf] }
  0x81   :  { %1490 = vmatpush.bf16.msrb.mxu0 %v2737_v21  ;;  %v2974_v21 = vld [vmem:[#allocation8 + $0x2d0] sm:$0xf0] }
  0x82   :  { %1503 = vmatpush.bf16.msrb.mxu1 %v2865_v25  ;;  %v2977_v22 = vor.u32 %v3538_v20, %v2974_v21  ;;  %v3005_v25 = vor.u32 %v3548_v24, %v3004_v23  ;;  %v3550_v20 = vld [vmem:[#allocation8 + $0x324] sm:$0xf]  ;;  %v3022_v21 = vld [vmem:[#allocation8 + $0x330] sm:$0xf0] }
  0x83   :  { %1516 = vmatpush.bf16.msrb.mxu2 %v2993_v13  ;;  %v2724_v13 = vld [vmem:[#allocation8 + $0xc8] sm:$0xf]  ;;  %v3025_v23 = vor.u32 %v3550_v20, %v3022_v21  ;;  %v3489_v20 = vld [vmem:[#allocation8 + $0x134] sm:$0xf0] }
  0x84   :  { %1484 = vmatpush.bf16.msra.mxu3 %v3005_v25  ;;  %v2868_v25 = vld [vmem:[#allocation8 + $0x1e8] sm:$0xf]  ;;  %v2725_v27 = vor.u32 %v3477_v18, %v2724_v13  ;;  %v3479_v13 = vld [vmem:[#allocation8 + $0xec] sm:$0xf] }
  0x85   :  { %1491 = vmatpush.bf16.msrb.mxu0 %v2721_v28  ;;  %v3574_v28 = vld [vmem:[#allocation8 + $0x3e4] sm:$0xf] }
  0x86   :  { %1504 = vmatpush.bf16.msrb.mxu1 %v2849_v31  ;;  %v3121_v31 = vor.u32 %v3574_v28, %v3118_v30  ;;  %v2708_v28 = vld [vmem:[#allocation8 + $0xa8] sm:$0xf]  ;;  %v3006_v30 = vld [vmem:[#allocation8 + $0x310] sm:$0xf0] }
  0x87   :  { %1517 = vmatpush.bf16.msrb.mxu2 %v2977_v22 }
  0x88   :  { %1529 = vmatpush.bf16.msrb.mxu3 %v3121_v31 }
  0x89   :  { %1492 = vmatpush.bf16.msrb.mxu0 %v2705_v34  ;;  %v2961_v34 = vor.u32 %v3534_v32, %v2958_v33  ;;  %v3473_v32 = vld [vmem:[#allocation8 + $0xb4] sm:$0xf0] }
  0x8a   :  { %1505 = vmatpush.bf16.msrb.mxu1 %v2833_v37  ;;  %v3105_v37 = vor.u32 %v3570_v35, %v3102_v36  ;;  %v2869_v35 = vor.u32 %v3513_v26, %v2868_v25 }
  0x8b   :  { %1518 = vmatpush.bf16.msrb.mxu2 %v2961_v34 }
  0x8c   :  { %1530 = vmatpush.bf16.msrb.mxu3 %v3105_v37  ;;  %v2709_v37 = vor.u32 %v3473_v32, %v2708_v28 }
  0x8d   :  { %1493 = vmatpush.bf16.msrb.mxu0 %v2689_v55  ;;  %v2945_v55 = vor.u32 %v3530_v38, %v2942_v39  ;;  %v2852_v39 = vld [vmem:[#allocation8 + $0x1c8] sm:$0xf] }
  0x8e   :  { %1506 = vmatpush.bf16.msrb.mxu1 %v2817_v42  ;;  %v3089_v42 = vor.u32 %v3566_v40, %v3086_v41  ;;  %v2692_v41 = vld [vmem:[#allocation8 + $0x88] sm:$0xf] }
  0x8f   :  { %1519 = vmatpush.bf16.msrb.mxu2 %v2945_v55  ;;  %v3509_v55 = vld [vmem:[#allocation8 + $0x1d4] sm:$0xf0] }
  0x90   :  { %1531 = vmatpush.bf16.msrb.mxu3 %v3089_v42  ;;  %v3469_v42 = vld [vmem:[#allocation8 + $0x94] sm:$0xf0] }
  0x91   :  { %1494 = vmatpush.bf16.msrb.mxu0 %v2673_v56  ;;  %v3526_v56 = vld [vmem:[#allocation8 + $0x264] sm:$0xf] }
  0x92   :  { %1507 = vmatpush.bf16.msrb.mxu1 %v2801_v54  ;;  %v2929_v45 = vor.u32 %v3526_v56, %v2926_v43  ;;  %v3054_v54 = vld [vmem:[#allocation8 + $0x370] sm:$0xf0]  ;;  %v2853_v56 = vor.u32 %v3509_v55, %v2852_v39  ;;  %v2693_v43 = vor.u32 %v3469_v42, %v2692_v41  ;;  %v3577_v39 = vld [vmem:[#allocation8 + $0x3f4] sm:$0xf0]  ;;  %v3511_v55 = vld [vmem:[#allocation8 + $0x1ec] sm:$0xf] }
  0x93   :  { %v3057_v58 = vor.u32 %v3558_v53, %v3054_v54  ;;  %v2660_v53 = vld [vmem:[#allocation8 + $0x48] sm:$0xf]  ;;  %v3461_v54 = vld [vmem:[#allocation8 + $0x54] sm:$0xf0] }
  0x94   :  { %1520 = vmatpush.bf16.msrb.mxu2 %v2929_v45  ;;  %v2836_v45 = vld [vmem:[#allocation8 + $0x1a8] sm:$0xf] }
  0x95   :  { %1495 = vmatpush.bf16.msrb.mxu0 %v2657_v48  ;;  %v3073_v48 = vor.u32 %v3562_v46, %v3070_v47  ;;  %v3505_v46 = vld [vmem:[#allocation8 + $0x1b4] sm:$0xf0]  ;;  %v2676_v47 = vld [vmem:[#allocation8 + $0x68] sm:$0xf] }
  0x96   :  { %1508 = vmatpush.bf16.msrb.mxu1 %v2785_v4  ;;  %v2740_v4 = vld [vmem:[#allocation8 + $0xe8] sm:$0xf] }
  0x97   :  { %1532 = vmatpush.bf16.msrb.mxu3 %v3073_v48  ;;  %v3465_v48 = vld [vmem:[#allocation8 + $0x74] sm:$0xf0] }
  0x98   :  { %1521 = vmatpush.bf16.msrb.mxu2 %v2913_v52  ;;  %v2677_v50 = vor.u32 %v3465_v48, %v2676_v47  ;;  %v3501_v52 = vld [vmem:[#allocation8 + $0x194] sm:$0xf0]  ;;  %v2710_v47 = vld [vmem:[#allocation8 + $0xb8] sm:$0xf0] }
  0x99   :  { %1496 = vmatpush.bf16.msrb.mxu0 %v2641_v62  ;;  %v2894_v62 = vld [vmem:[#allocation8 + $0x230] sm:$0xf0] }
  0x9a   :  { %1509 = vmatpush.bf16.msrb.mxu1 %v2769_v19  ;;  %v2897_v63 = vor.u32 %v3518_v61, %v2894_v62  ;;  %v3497_v61 = vld [vmem:[#allocation8 + $0x174] sm:$0xf0]  ;;  %v2644_v62 = vld [vmem:[#allocation8 + $0x28] sm:$0xf] }
  0x9b   :  { %1533 = vmatpush.bf16.msrb.mxu3 %v3057_v58  ;;  %v214_v58 = vperm.slane %v3966_v44, 2 }
  0x9c   :  { %1522 = vmatpush.bf16.msrb.mxu2 %v2897_v63  ;;  %v3457_v63 = vld [vmem:[#allocation8 + $0x34] sm:$0xf0] }
  0x9d   :  { %1497 = vmatpush.bf16.msrb.mxu0 %v2625_v12  ;;  %v2741_v12 = vor.u32 %v3481_v5, %v2740_v4  ;;  %v2645_v4 = vor.u32 %v3457_v63, %v2644_v62  ;;  %v215_v5 = vperm.slane %v3966_v44, 3  ;;  %v2948_v62 = vld [vmem:[#allocation8 + $0x288] sm:$0xf] }
  0x9e   :  { %1510 = vmatpush.bf16.msrb.mxu1 %v2753_v29  ;;  %v3546_v29 = vld [vmem:[#allocation8 + $0x304] sm:$0xf] }
  0x9f   :  { %1534 = vmatpush.bf16.msrb.mxu3 %v3041_v6  ;;  %v3009_v33 = vor.u32 %v3546_v29, %v3006_v30  ;;  %v2788_v6 = vld [vmem:[#allocation8 + $0x148] sm:$0xf]  ;;  %v3541_v29 = vld [vmem:[#allocation8 + $0x2d4] sm:$0xf0]  ;;  %v3475_v30 = vld [vmem:[#allocation8 + $0xcc] sm:$0xf] }
  0xa0   :  { %1523 = vmatpush.bf16.msrb.mxu2 %v2881_v14  ;;  %v2742_v14 = vld [vmem:[#allocation8 + $0xf8] sm:$0xf0] }
  0xa3   :  { %1535 = vmatpush.bf16.msrb.mxu3 %v3025_v23  ;;  %v2745_v23 = vor.u32 %v3479_v13, %v2742_v14  ;;  %v2932_v13 = vld [vmem:[#allocation8 + $0x268] sm:$0xf]  ;;  %v3529_v14 = vld [vmem:[#allocation8 + $0x274] sm:$0xf0] }
  0xa7   :  { %1536 = vmatpush.bf16.msrb.mxu3 %v3009_v33 }
  0xbd   :  { %v549_v57 = vpop.f32.mrf.mxu0 }
  0xbe   :  { %v550_v59 = vadd.f32 %v549_v57, %v212_v49  ;;  %v562_v60 = vpop.f32.mrf.mxu1  ;;  %v2837_v49 = vor.u32 %v3505_v46, %v2836_v45  ;;  %v2821_v57 = vor.u32 %v3501_v52, %v2820_v51  ;;  %v3471_v45 = vld [vmem:[#allocation8 + $0xac] sm:$0xf]  ;;  %v3108_v52 = vld [vmem:[#allocation8 + $0x3c8] sm:$0xf] }
  0xc0   :  { %v563_v0 = vadd.f32 %v562_v60, %v550_v59  ;;  %v2661_v59 = vor.u32 %v3461_v54, %v2660_v53  ;;  %v2804_v60 = vld [vmem:[#allocation8 + $0x168] sm:$0xf]  ;;  %v3573_v53 = vld [vmem:[#allocation8 + $0x3d4] sm:$0xf0] }
  0xc2   :  { %vm644_vm0 = vcmp.gt.f32.partialorder %v563_v0, 0.0  ;;  %v648_v7 = vmul.f32 0.2, %v563_v0 }
  0xc4   :  { %v652_v10 = vsel %vm644_vm0, %v563_v0, %v648_v7  ;;  %v3493_v7 = vld [vmem:[#allocation8 + $0x154] sm:$0xf0] }
  0xc5   :  { %v575_v11 = vpop.f32.mrf.mxu2  ;;  %v3970_v15 = vpack.c.bf16 %v652_v10, %v652_v10  ;;  %v551_v19 = vpop.f32.mrf.mxu0  ;;  %v3453_v10 = vld [vmem:[#allocation8 + $0x14] sm:$0xf0] }
  0xc6   :  { %v576_v16 = vadd.f32 %v575_v11, %v213_v3  ;;  %v588_v17 = vpop.f32.mrf.mxu3  ;;  %v564_v22 = vpop.f32.mrf.mxu1  ;;  %v2805_v3 = vor.u32 %v3497_v61, %v2804_v60  ;;  %v2996_v11 = vld [vmem:[#allocation8 + $0x2e8] sm:$0xf]  ;;  %v2629_v18 = vor.u32 %v3453_v10, %v2628_v9  ;;  %v3507_v60 = vld [vmem:[#allocation8 + $0x1cc] sm:$0xf]  ;;  %v2854_v61 = vld [vmem:[#allocation8 + $0x1d8] sm:$0xf0] }
  0xc7   :  { %1446 = vmatmul.bf16.vlgmr.msra.gmra.mxu0 %v3970_v15  ;;  %v2772_v19 = vld [vmem:[#allocation8 + $0x128] sm:$0xf]  ;;  %v3503_v9 = vld [vmem:[#allocation8 + $0x1ac] sm:$0xf]  ;;  %v2838_v10 = vld [vmem:[#allocation8 + $0x1b8] sm:$0xf0] }
  0xc8   :  { %v589_v24 = vadd.f32 %v588_v17, %v576_v16  ;;  %1542 = vmatpush.bf16.msra.mxu0 %v2741_v12  ;;  %v3545_v12 = vld [vmem:[#allocation8 + $0x2f4] sm:$0xf0]  ;;  %v2789_v17 = vor.u32 %v3493_v7, %v2788_v6  ;;  %v2773_v33 = vor.u32 %v3489_v20, %v2772_v19 }
  0xc9   :  { %v2997_v22 = vor.u32 %v3545_v12, %v2996_v11  ;;  %v3463_v11 = vld [vmem:[#allocation8 + $0x6c] sm:$0xf]  ;;  %v2678_v12 = vld [vmem:[#allocation8 + $0x78] sm:$0xf0]  ;;  %v3565_v20 = vld [vmem:[#allocation8 + $0x394] sm:$0xf0] }
  0xca   :  { %vm645_vm1 = vcmp.gt.f32.partialorder %v589_v24, 0.0  ;;  %v649_v31 = vmul.f32 0.2, %v589_v24  ;;  %v2681_v19 = vor.u32 %v3463_v11, %v2678_v12  ;;  %v3126_v11 = vld [vmem:[#allocation8 + $0x3f8] sm:$0xf0] }
  0xcc   :  { %v653_v34 = vsel %vm645_vm1, %v589_v24, %v649_v31  ;;  %1543 = vmatpush.bf16.msra.mxu0 %v2725_v27  ;;  %v2980_v24 = vld [vmem:[#allocation8 + $0x2c8] sm:$0xf]  ;;  %v2726_v31 = vld [vmem:[#allocation8 + $0xd8] sm:$0xf0] }
  0xcd   :  { %v3973_v36 = vpack.c.bf16 %v653_v34, %v653_v34  ;;  %v577_v38 = vpop.f32.mrf.mxu2  ;;  %v2756_v34 = vld [vmem:[#allocation8 + $0x108] sm:$0xf]  ;;  %v2981_v41 = vor.u32 %v3541_v29, %v2980_v24  ;;  %v2729_v42 = vor.u32 %v3475_v30, %v2726_v31  ;;  %v2662_v24 = vld [vmem:[#allocation8 + $0x58] sm:$0xf0] }
  0xce   :  { %v590_v40 = vpop.f32.mrf.mxu3  ;;  %v3060_v30 = vld [vmem:[#allocation8 + $0x368] sm:$0xf] }
  0xcf   :  { %1459 = vmatmul.bf16.vlgmr.msra.gmra.mxu1 %v3973_v36  ;;  %v2870_v40 = vld [vmem:[#allocation8 + $0x1f8] sm:$0xf0] }
  0xd0   :  { %1555 = vmatpush.bf16.msra.mxu1 %v2869_v35  ;;  %1544 = vmatpush.bf16.msra.mxu0 %v2709_v37  ;;  %v3485_v35 = vld [vmem:[#allocation8 + $0x114] sm:$0xf0]  ;;  %v3124_v37 = vld [vmem:[#allocation8 + $0x3e8] sm:$0xf]  ;;  %v2873_v51 = vor.u32 %v3511_v55, %v2870_v40 }
  0xd1   :  { %v2757_v48 = vor.u32 %v3485_v35, %v2756_v34  ;;  %v2806_v34 = vld [vmem:[#allocation8 + $0x178] sm:$0xf0]  ;;  %v3521_v55 = vld [vmem:[#allocation8 + $0x234] sm:$0xf0] }
  0xd4   :  { %1556 = vmatpush.bf16.msra.mxu1 %v2853_v56  ;;  %1545 = vmatpush.bf16.msra.mxu0 %v2693_v43  ;;  %v2964_v56 = vld [vmem:[#allocation8 + $0x2a8] sm:$0xf]  ;;  %v3537_v43 = vld [vmem:[#allocation8 + $0x2b4] sm:$0xf0] }
  0xd7   :  { %1498 = vmatmul.bf16.vlgmr.msrb.gmra.mxu0 %v3970_v15 }
  0xd8   :  { %1557 = vmatpush.bf16.msra.mxu1 %v2837_v49  ;;  %1546 = vmatpush.bf16.msra.mxu0 %v2677_v50  ;;  %v3125_v50 = vor.u32 %v3577_v39, %v3124_v37  ;;  %v3455_v37 = vld [vmem:[#allocation8 + $0x2c] sm:$0xf]  ;;  %v2900_v39 = vld [vmem:[#allocation8 + $0x228] sm:$0xf] }
  0xdc   :  { %1558 = vmatpush.bf16.msra.mxu1 %v2821_v57  ;;  %1547 = vmatpush.bf16.msra.mxu0 %v2661_v59  ;;  %v2713_v59 = vor.u32 %v3471_v45, %v2710_v47  ;;  %v3491_v45 = vld [vmem:[#allocation8 + $0x14c] sm:$0xf]  ;;  %v2901_v47 = vor.u32 %v3521_v55, %v2900_v39  ;;  %v2902_v55 = vld [vmem:[#allocation8 + $0x238] sm:$0xf0] }
  0xdd   :  { %v601_v0 = vpop.f32.mrf.mxu0  ;;  %v3519_v39 = vld [vmem:[#allocation8 + $0x22c] sm:$0xf] }
  0xde   :  { %v602_v1 = vadd.f32 %v601_v0, %v214_v58  ;;  %v614_v2 = vpop.f32.mrf.mxu1  ;;  %v2965_v58 = vor.u32 %v3537_v43, %v2964_v56  ;;  %v3533_v0 = vld [vmem:[#allocation8 + $0x294] sm:$0xf0] }
  0xdf   :  { %1511 = vmatmul.bf16.vlgmr.msrb.gmra.mxu1 %v3973_v36  ;;  %v2949_v6 = vor.u32 %v3533_v0, %v2948_v62  ;;  %v3557_v43 = vld [vmem:[#allocation8 + $0x354] sm:$0xf0]  ;;  %v3487_v62 = vld [vmem:[#allocation8 + $0x12c] sm:$0xf] }
  0xe0   :  { %v615_v8 = vadd.f32 %v614_v2, %v602_v1  ;;  %1559 = vmatpush.bf16.msra.mxu1 %v2805_v3  ;;  %1548 = vmatpush.bf16.msra.mxu0 %v2645_v4  ;;  %v3467_v1 = vld [vmem:[#allocation8 + $0x8c] sm:$0xf]  ;;  %v2694_v2 = vld [vmem:[#allocation8 + $0x98] sm:$0xf0]  ;;  %v3109_v3 = vor.u32 %v3573_v53, %v3108_v52  ;;  %v2857_v4 = vor.u32 %v3507_v60, %v2854_v61  ;;  %v3553_v61 = vld [vmem:[#allocation8 + $0x334] sm:$0xf0] }
  0xe1   :  { %v2697_v7 = vor.u32 %v3467_v1, %v2694_v2 }
  0xe2   :  { %vm646_vm2 = vcmp.gt.f32.partialorder %v615_v8, 0.0  ;;  %v650_v16 = vmul.f32 0.2, %v615_v8 }
  0xe4   :  { %v654_v44 = vsel %vm646_vm2, %v615_v8, %v650_v16  ;;  %1560 = vmatpush.bf16.msra.mxu1 %v2789_v17  ;;  %1549 = vmatpush.bf16.msra.mxu0 %v2629_v18  ;;  %v3569_v8 = vld [vmem:[#allocation8 + $0x3b4] sm:$0xf0]  ;;  %v2841_v17 = vor.u32 %v3503_v9, %v2838_v10  ;;  %v3076_v18 = vld [vmem:[#allocation8 + $0x388] sm:$0xf]  ;;  %v2758_v9 = vld [vmem:[#allocation8 + $0x118] sm:$0xf0] }
  0xe5   :  { %v627_v21 = vpop.f32.mrf.mxu2  ;;  %v3980_v25 = vpack.c.bf16 %v654_v44, %v654_v44  ;;  %v603_v28 = vpop.f32.mrf.mxu0  ;;  %v3499_v44 = vld [vmem:[#allocation8 + $0x18c] sm:$0xf]  ;;  %vm1799_vm2 = vcmask 1042434  }
  0xe6   :  { %v628_v26 = vadd.f32 %v627_v21, %v215_v5  ;;  %v640_v27 = vpop.f32.mrf.mxu3  ;;  %v616_v32 = vpop.f32.mrf.mxu1  ;;  %v3092_v5 = vld [vmem:[#allocation8 + $0x3a8] sm:$0xf]  ;;  %v2822_v21 = vld [vmem:[#allocation8 + $0x198] sm:$0xf0]  ;;  %v3077_v28 = vor.u32 %v3565_v20, %v3076_v18  ;;  %v3575_v10 = vld [vmem:[#allocation8 + $0x3ec] sm:$0xf] }
  0xe7   :  { %1472 = vmatmul.bf16.vlgmr.msra.gmra.mxu2 %v3980_v25  ;;  %1550 = vmatmul.bf16.vlgmr.msra.gmra.mxu0 %v3970_v15  ;;  %v3093_v16 = vor.u32 %v3569_v8, %v3092_v5  ;;  %v2825_v29 = vor.u32 %v3499_v44, %v2822_v21  ;;  %v3561_v32 = vld [vmem:[#allocation8 + $0x374] sm:$0xf0]  ;;  %v2982_v5 = vld [vmem:[#allocation8 + $0x2d8] sm:$0xf0]  ;;  %v3483_v8 = vld [vmem:[#allocation8 + $0x10c] sm:$0xf]  ;;  %v3129_v18 = vor.u32 %v3575_v10, %v3126_v11 }
  0xe8   :  { %v641_v38 = vadd.f32 %v640_v27, %v628_v26  ;;  %1568 = vmatpush.bf16.msra.mxu2 %v2997_v22  ;;  %1594 = vmatpush.bf16.msrb.mxu0 %v2745_v23  ;;  %v2933_v22 = vor.u32 %v3529_v14, %v2932_v13  ;;  %v3459_v23 = vld [vmem:[#allocation8 + $0x4c] sm:$0xf]  ;;  %v2916_v26 = vld [vmem:[#allocation8 + $0x248] sm:$0xf]  ;;  %v3525_v27 = vld [vmem:[#allocation8 + $0x254] sm:$0xf0]  ;;  %v3061_v40 = vor.u32 %v3561_v32, %v3060_v30 }
  0xe9   :  { %1561 = vmatpush.bf16.msra.mxu1 %v2773_v33  ;;  %v2665_v31 = vor.u32 %v3459_v23, %v2662_v24  ;;  %v3495_v33 = vld [vmem:[#allocation8 + $0x16c] sm:$0xf]  ;;  %v2917_v35 = vor.u32 %v3525_v27, %v2916_v26  ;;  %v2761_v14 = vor.u32 %v3483_v8, %v2758_v9  ;;  %v3110_v20 = vld [vmem:[#allocation8 + $0x3d8] sm:$0xf0] }
  0xea   :  { %vm647_vm3 = vcmp.gt.f32.partialorder %v641_v38, 0.0  ;;  %v651_v46 = vmul.f32 0.2, %v641_v38  ;;  %v3531_v21 = vld [vmem:[#allocation8 + $0x28c] sm:$0xf] }
  0xeb   :  { %v3567_v24 = vld [vmem:[#allocation8 + $0x3ac] sm:$0xf]  ;;  %v3094_v26 = vld [vmem:[#allocation8 + $0x3b8] sm:$0xf0] }
  0xec   :  { %v655_v49 = vsel %vm647_vm3, %v641_v38, %v651_v46  ;;  %1569 = vmatpush.bf16.msra.mxu2 %v2981_v41  ;;  %1595 = vmatpush.bf16.msrb.mxu0 %v2729_v42  ;;  %v2646_v38 = vld [vmem:[#allocation8 + $0x38] sm:$0xf0]  ;;  %v2809_v41 = vor.u32 %v3495_v33, %v2806_v34  ;;  %v3044_v42 = vld [vmem:[#allocation8 + $0x348] sm:$0xf]  ;;  %v3563_v30 = vld [vmem:[#allocation8 + $0x38c] sm:$0xf] }
  0xed   :  { %v3984_v54 = vpack.c.bf16 %v655_v49, %v655_v49  ;;  %v629_v57 = vpop.f32.mrf.mxu2  ;;  %1562 = vmatpush.bf16.msra.mxu1 %v2757_v48  ;;  %v2649_v56 = vor.u32 %v3455_v37, %v2646_v38  ;;  %v2790_v46 = vld [vmem:[#allocation8 + $0x158] sm:$0xf0]  ;;  %v3451_v48 = vld [vmem:[#allocation8 + $0xc] sm:$0xf]  ;;  %v3045_v52 = vor.u32 %v3557_v43, %v3044_v42 }
  0xee   :  { %v642_v63 = vpop.f32.mrf.mxu3  ;;  %v2630_v49 = vld [vmem:[#allocation8 + $0x18] sm:$0xf0]  ;;  %v2793_v53 = vor.u32 %v3491_v45, %v2790_v46  ;;  %v3543_v57 = vld [vmem:[#allocation8 + $0x2ec] sm:$0xf] }
  0xef   :  { %1485 = vmatmul.bf16.vlgmr.msra.gmra.mxu3 %v3984_v54  ;;  %v2633_v60 = vor.u32 %v3451_v48, %v2630_v49  ;;  %v2774_v63 = vld [vmem:[#allocation8 + $0x138] sm:$0xf0]  ;;  %v3523_v33 = vld [vmem:[#allocation8 + $0x24c] sm:$0xf] }
  0xf0   :  { %1581 = vmatpush.bf16.msra.mxu3 %v3125_v50  ;;  %1570 = vmatpush.bf16.msra.mxu2 %v2965_v58  ;;  %v2884_v50 = vld [vmem:[#allocation8 + $0x208] sm:$0xf]  ;;  %v2998_v58 = vld [vmem:[#allocation8 + $0x2f8] sm:$0xf0]  ;;  %v3559_v37 = vld [vmem:[#allocation8 + $0x36c] sm:$0xf] }
  0xf1   :  { %1607 = vmatpush.bf16.msrb.mxu1 %v2873_v51  ;;  %1596 = vmatpush.bf16.msrb.mxu0 %v2713_v59  ;;  %v3517_v51 = vld [vmem:[#allocation8 + $0x214] sm:$0xf0]  ;;  %v3028_v59 = vld [vmem:[#allocation8 + $0x328] sm:$0xf]  ;;  %v3001_v1 = vor.u32 %v3543_v57, %v2998_v58  ;;  %v2918_v34 = vld [vmem:[#allocation8 + $0x258] sm:$0xf0] }
  0xf2   :  { %1563 = vmatmul.bf16.vlgmr.msra.gmra.mxu1 %v3973_v36  ;;  %v2885_v0 = vor.u32 %v3517_v51, %v2884_v50  ;;  %v3029_v2 = vor.u32 %v3553_v61, %v3028_v59  ;;  %v3062_v38 = vld [vmem:[#allocation8 + $0x378] sm:$0xf0]  ;;  %v3515_v43 = vld [vmem:[#allocation8 + $0x20c] sm:$0xf]  ;;  %v3996_v57 = vld [vmem:[#allocation10] sm:$0xf] }
  0xf3   :  { %v3046_v42 = vld [vmem:[#allocation8 + $0x358] sm:$0xf0]  ;;  %v3547_v51 = vld [vmem:[#allocation8 + $0x30c] sm:$0xf]  ;;  %v790_v58 = vperm.slane %v3996_v57, 0 }
  0xf4   :  { %1582 = vmatpush.bf16.msra.mxu3 %v3109_v3  ;;  %1571 = vmatpush.bf16.msra.mxu2 %v2949_v6  ;;  %v2777_v3 = vor.u32 %v3487_v62, %v2774_v63  ;;  %v3012_v6 = vld [vmem:[#allocation8 + $0x308] sm:$0xf]  ;;  %v2886_v45 = vld [vmem:[#allocation8 + $0x218] sm:$0xf0] }
  0xf5   :  { %1608 = vmatpush.bf16.msrb.mxu1 %v2857_v4  ;;  %1597 = vmatpush.bf16.msrb.mxu0 %v2697_v7  ;;  %v3539_v4 = vld [vmem:[#allocation8 + $0x2cc] sm:$0xf]  ;;  %v3549_v7 = vld [vmem:[#allocation8 + $0x314] sm:$0xf0]  ;;  %v3030_v48 = vld [vmem:[#allocation8 + $0x338] sm:$0xf0]  ;;  %v2889_v49 = vor.u32 %v3515_v43, %v2886_v45 }
  0xf6   :  { %v2985_v12 = vor.u32 %v3539_v4, %v2982_v5  ;;  %v3013_v13 = vor.u32 %v3549_v7, %v3012_v6 }
  0xf7   :  { %1524 = vmatmul.bf16.vlgmr.msrb.gmra.mxu2 %v3980_v25 }
  0xf8   :  { %1583 = vmatpush.bf16.msra.mxu3 %v3093_v16  ;;  %1572 = vmatpush.bf16.msra.mxu2 %v2933_v22  ;;  %v3535_v16 = vld [vmem:[#allocation8 + $0x2ac] sm:$0xf]  ;;  %v2950_v22 = vld [vmem:[#allocation8 + $0x298] sm:$0xf0] }
  0xf9   :  { %1609 = vmatpush.bf16.msrb.mxu1 %v2841_v17  ;;  %1598 = vmatpush.bf16.msrb.mxu0 %v2681_v19  ;;  %v2966_v17 = vld [vmem:[#allocation8 + $0x2b8] sm:$0xf0]  ;;  %v3571_v19 = vld [vmem:[#allocation8 + $0x3cc] sm:$0xf]  ;;  %v2953_v27 = vor.u32 %v3531_v21, %v2950_v22 }
  0xfa   :  { %v2969_v44 = vor.u32 %v3535_v16, %v2966_v17  ;;  %v3113_v23 = vor.u32 %v3571_v19, %v3110_v20 }
  0xfc   :  { %1584 = vmatpush.bf16.msra.mxu3 %v3077_v28  ;;  %1573 = vmatpush.bf16.msra.mxu2 %v2917_v35  ;;  %v2934_v28 = vld [vmem:[#allocation8 + $0x278] sm:$0xf0] }
  0xfd   :  { %1610 = vmatpush.bf16.msrb.mxu1 %v2825_v29  ;;  %1599 = vmatpush.bf16.msrb.mxu0 %v2665_v31  ;;  %v3097_v29 = vor.u32 %v3567_v24, %v3094_v26  ;;  %v3078_v31 = vld [vmem:[#allocation8 + $0x398] sm:$0xf0] }
  0xfe   :  { %v3081_v35 = vor.u32 %v3563_v30, %v3078_v31 }
  0xff   :  { %1537 = vmatmul.bf16.vlgmr.msrb.gmra.mxu3 %v3984_v54 }
 0x100   :  { %1585 = vmatpush.bf16.msra.mxu3 %v3061_v40  ;;  %1574 = vmatpush.bf16.msra.mxu2 %v2901_v47  ;;  %v3065_v40 = vor.u32 %v3559_v37, %v3062_v38  ;;  %v3551_v47 = vld [vmem:[#allocation8 + $0x32c] sm:$0xf] }
 0x101   :  { %1611 = vmatpush.bf16.msrb.mxu1 %v2809_v41  ;;  %1600 = vmatpush.bf16.msrb.mxu0 %v2649_v56  ;;  %v3555_v41 = vld [vmem:[#allocation8 + $0x34c] sm:$0xf]  ;;  %v2905_v56 = vor.u32 %v3519_v39, %v2902_v55  ;;  %v3033_v50 = vor.u32 %v3551_v47, %v3030_v48  ;;  %v792_v47 = vperm.slane %v3996_v57, 2 }
 0x102   :  { %v3049_v46 = vor.u32 %v3555_v41, %v3046_v42 }
 0x104   :  { %1586 = vmatpush.bf16.msra.mxu3 %v3045_v52  ;;  %1575 = vmatpush.bf16.msra.mxu2 %v2885_v0  ;;  %v3014_v52 = vld [vmem:[#allocation8 + $0x318] sm:$0xf0] }
 0x105   :  { %1612 = vmatpush.bf16.msrb.mxu1 %v2793_v53  ;;  %1601 = vmatpush.bf16.msrb.mxu0 %v2633_v60  ;;  %v3017_v53 = vor.u32 %v3547_v51, %v3014_v52 }
 0x107   :  { %1576 = vmatmul.bf16.vlgmr.msra.gmra.mxu2 %v3980_v25 }
 0x108   :  { %1620 = vmatpush.bf16.msrb.mxu2 %v3001_v1  ;;  %1587 = vmatpush.bf16.msra.mxu3 %v3029_v2  ;;  %v791_v2 = vperm.slane %v3996_v57, 1 }
 0x109   :  { %1613 = vmatpush.bf16.msrb.mxu1 %v2777_v3  ;;  %1602 = vmatmul.bf16.vlgmr.msrb.gmra.mxu0 %v3970_v15  ;;  %v3527_v15 = vld [vmem:[#allocation8 + $0x26c] sm:$0xf] }
 0x10a   :  { %v2937_v32 = vor.u32 %v3527_v15, %v2934_v28 }
 0x10c   :  { %1621 = vmatpush.bf16.msrb.mxu2 %v2985_v12  ;;  %1588 = vmatpush.bf16.msra.mxu3 %v3013_v13 }
 0x10d   :  { %1614 = vmatpush.bf16.msrb.mxu1 %v2761_v14 }
 0x10f   :  { %1589 = vmatmul.bf16.vlgmr.msra.gmra.mxu3 %v3984_v54 }
 0x110   :  { %1633 = vmatpush.bf16.msrb.mxu3 %v3129_v18  ;;  %1615 = vmatmul.bf16.vlgmr.msrb.gmra.mxu1 %v3973_v36  ;;  %v2921_v36 = vor.u32 %v3523_v33, %v2918_v34 }
 0x111   :  { %1622 = vmatpush.bf16.msrb.mxu2 %v2969_v44 }
 0x114   :  { %1634 = vmatpush.bf16.msrb.mxu3 %v3113_v23 }
 0x115   :  { %1623 = vmatpush.bf16.msrb.mxu2 %v2953_v27 }
 0x118   :  { %1635 = vmatpush.bf16.msrb.mxu3 %v3097_v29 }
 0x119   :  { %1624 = vmatpush.bf16.msrb.mxu2 %v2937_v32 }
 0x11c   :  { %1636 = vmatpush.bf16.msrb.mxu3 %v3081_v35 }
 0x11d   :  { %1625 = vmatpush.bf16.msrb.mxu2 %v2921_v36 }
 0x120   :  { %1637 = vmatpush.bf16.msrb.mxu3 %v3065_v40 }
 0x121   :  { %1626 = vmatpush.bf16.msrb.mxu2 %v2905_v56 }
 0x124   :  { %1638 = vmatpush.bf16.msrb.mxu3 %v3049_v46 }
 0x125   :  { %1627 = vmatpush.bf16.msrb.mxu2 %v2889_v49 }
 0x128   :  { %1639 = vmatpush.bf16.msrb.mxu3 %v3033_v50  ;;  %1628 = vmatmul.bf16.vlgmr.msrb.gmra.mxu2 %v3980_v25 }
 0x12c   :  { %1640 = vmatpush.bf16.msrb.mxu3 %v3017_v53 }
 0x12f   :  { %1641 = vmatmul.bf16.vlgmr.msrb.gmra.mxu3 %v3984_v54 }
 0x144   :  { %v1447_v59 = vpop.f32.mrf.mxu0 }
 0x145   :  { %v1448_v60 = vadd.f32 %v1447_v59, %v790_v58 }
 0x14c   :  { %v1460_v61 = vpop.f32.mrf.mxu1  ;;  %v1449_v63 = vpop.f32.mrf.mxu0 }
 0x14d   :  { %v1461_v62 = vadd.f32 %v1460_v61, %v1448_v60 }
 0x154   :  { %v1462_v0 = vpop.f32.mrf.mxu1  ;;  %v1499_v1 = vpop.f32.mrf.mxu0 }
 0x155   :  { %v1500_v3 = vadd.f32 %v1499_v1, %v791_v2 }
 0x15c   :  { %v1512_v4 = vpop.f32.mrf.mxu1  ;;  %v1501_v25 = vpop.f32.mrf.mxu0 }
 0x15d   :  { %v1513_v5 = vadd.f32 %v1512_v4, %v1500_v3 }
 0x164   :  { %v1514_v6 = vpop.f32.mrf.mxu1  ;;  %v1551_v7 = vpop.f32.mrf.mxu0 }
 0x165   :  { %v1552_v60 = vadd.f32 %v1551_v7, %v792_v47  ;;  %v3641_v47 = vld [vmem:[#allocation13 + $0x1f4] sm:$0xf0] }
 0x16a   :  { %v1473_v54 = vpop.f32.mrf.mxu2 }
 0x16b   :  { %v1474_v8 = vadd.f32 %v1473_v54, %v1461_v62 }
 0x16c   :  { %v1553_v10 = vpop.f32.mrf.mxu0 }
 0x16f   :  { %v1564_v9 = vpop.f32.mrf.mxu1 }
 0x170   :  { %v1565_v0 = vadd.f32 %v1564_v9, %v1552_v60  ;;  %v4055_v60 = vld [vmem:[%s4176_s5] sm:$0xf] }
 0x172   :  { %v1486_v11 = vpop.f32.mrf.mxu3  ;;  %v1475_v13 = vpop.f32.mrf.mxu2 }
 0x173   :  { %v4000_v12 = vadd.f32 %v1486_v11, %v1474_v8 }
 0x175   :  { %v1647_v14 = vsel %vm1646_vm4, %v4000_v12, 0.0  ;;  %v1675_v16 = vmul.f32 %v4000_v12, %v4000_v12 }
 0x176   :  { %v1648_v17 = vrot.slane %v1647_v14, 4 }
 0x177   :  { %v1679_v18 = vsel %vm1646_vm4, %v1675_v16, 0.0  ;;  %v1566_v19 = vpop.f32.mrf.mxu1 }
 0x178   :  { %v1649_v20 = vadd.f32 %v1648_v17, %v1647_v14  ;;  %v1680_v44 = vrot.slane %v1679_v18, 4 }
 0x17a   :  { %v1650_v21 = vrot.slane %v1649_v20, 2  ;;  %v1681_v22 = vadd.f32 %v1680_v44, %v1679_v18  ;;  %v1488_v23 = vpop.f32.mrf.mxu3  ;;  %v1525_v27 = vpop.f32.mrf.mxu2 }
 0x17b   :  { %v1526_v31 = vadd.f32 %v1525_v27, %v1513_v5 }
 0x17c   :  { %v1651_v24 = vadd.f32 %v1650_v21, %v1649_v20  ;;  %v1682_v26 = vrot.slane %v1681_v22, 2 }
 0x17e   :  { %v1652_v15 = vrot.slane %v1651_v24, 1  ;;  %v1683_v28 = vadd.f32 %v1682_v26, %v1681_v22 }
 0x180   :  { %v1653_v29 = vadd.f32 %v1652_v15, %v1651_v24  ;;  %v1684_v30 = vrot.slane %v1683_v28, 1 }
 0x182   :  { %v1685_v32 = vadd.f32 %v1684_v30, %v1683_v28  ;;  %v4007_v33 = vmul.f32 0.5, %v1653_v29  ;;  %v1538_v34 = vpop.f32.mrf.mxu3  ;;  %v1527_v36 = vpop.f32.mrf.mxu2 }
 0x183   :  { %v4009_v35 = vadd.f32 %v1538_v34, %v1526_v31  ;;  %v3188_v31 = vld [vmem:[#allocation13 + $0x70] sm:$0xf] }
 0x184   :  { %v1711_v37 = vmul.f32 0.5, %v1685_v32  ;;  %v1715_v38 = vmul.f32 %v4007_v33, %v4007_v33  ;;  %v3593_v32 = vld [vmem:[#allocation13 + $0x74] sm:$0xf0] }
 0x185   :  { %v1654_v39 = vsel %vm1646_vm4, %v4009_v35, 0.0  ;;  %v1676_v55 = vmul.f32 %v4009_v35, %v4009_v35  ;;  %v3189_v34 = vor.u32 %v3593_v32, %v3188_v31 }
 0x186   :  { %v1719_v40 = vsub.f32 %v1711_v37, %v1715_v38  ;;  %v1655_v41 = vrot.slane %v1654_v39, 4  ;;  %v4017_v42 = vpop.f32.mrf.mxu0  ;;  %v3252_v37 = vld [vmem:[#allocation13 + $0xf0] sm:$0xf]  ;;  %v3609_v38 = vld [vmem:[#allocation13 + $0xf4] sm:$0xf0] }
 0x187   :  { %v1686_v56 = vsel %vm1646_vm4, %v1676_v55, 0.0  ;;  %v3253_v55 = vor.u32 %v3609_v38, %v3252_v37  ;;  %2231 = vmatpush.bf16.msra.mxu0 %v3189_v34  ;;  %v3637_v34 = vld [vmem:[#allocation13 + $0x1d4] sm:$0xf0] }
 0x188   :  { %v1723_v43 = vmax.f32 %v1719_v40, 0.0  ;;  %v1656_v45 = vadd.f32 %v1655_v41, %v1654_v39  ;;  %v1687_v46 = vrot.slane %v1686_v56, 4  ;;  %v3316_v40 = vld [vmem:[#allocation13 + $0x170] sm:$0xf]  ;;  %v3625_v41 = vld [vmem:[#allocation13 + $0x174] sm:$0xf0] }
 0x189   :  { %2244 = vmatpush.bf16.msra.mxu1 %v3253_v55  ;;  %v3228_v55 = vld [vmem:[#allocation13 + $0xc0] sm:$0xf] }
 0x18a   :  { %v4021_v48 = vadd.f32 1e-05, %v1723_v43  ;;  %v1657_v49 = vrot.slane %v1656_v45, 2  ;;  %v1688_v50 = vadd.f32 %v1687_v46, %v1686_v56  ;;  %v1540_v51 = vpop.f32.mrf.mxu3  ;;  %v1577_v59 = vpop.f32.mrf.mxu2  ;;  %v3380_v46 = vld [vmem:[#allocation13 + $0x1f0] sm:$0xf] }
 0x18b   :  { %v1578_v5 = vadd.f32 %v1577_v59, %v1565_v0  ;;  %v3591_v59 = vld [vmem:[#allocation13 + $0x64] sm:$0xf0] }
 0x18c   :  { %v1658_v52 = vadd.f32 %v1657_v49, %v1656_v45  ;;  %v1689_v53 = vrot.slane %v1688_v50, 2  ;;  %3654 = vrsqrt.f32 %v4021_v48  ;;  %v3317_v45 = vor.u32 %v3625_v41, %v3316_v40  ;;  %v3607_v0 = vld [vmem:[#allocation13 + $0xe4] sm:$0xf0]  ;;  %v3292_v41 = vld [vmem:[#allocation13 + $0x140] sm:$0xf] }
 0x18d   :  { %v4023_v58 = vpop.f32.mrf.mxu1  ;;  %vm1737_vm6 = vweird.f32 %v4021_v48  ;;  %v3603_v40 = vld [vmem:[#allocation13 + $0xc4] sm:$0xf0] }
 0x18e   :  { %v1659_v61 = vrot.slane %v1658_v52, 1  ;;  %v1690_v62 = vadd.f32 %v1689_v53, %v1688_v50  ;;  %v1605_v63 = vpop.f32.mrf.mxu0  ;;  %v793_v50 = vperm.slane %v3996_v57, 3  ;;  %v3180_v53 = vld [vmem:[#allocation13 + $0x60] sm:$0xf]  ;;  %2257 = vmatpush.bf16.msra.mxu2 %v3317_v45 }
 0x18f   :  { %v3244_v63 = vld [vmem:[#allocation13 + $0xe0] sm:$0xf] }
 0x190   :  { %v1660_v1 = vadd.f32 %v1659_v61, %v1658_v52  ;;  %v1691_v2 = vrot.slane %v1690_v62, 1  ;;  %v3381_v61 = vor.u32 %v3641_v47, %v3380_v46  ;;  %v3229_v47 = vor.u32 %v3603_v40, %v3228_v55 }
 0x192   :  { %v1692_v3 = vadd.f32 %v1691_v2, %v1690_v62  ;;  %v4026_v4 = vmul.f32 0.5, %v1660_v1  ;;  %v4028_v25 = vpop.eup %3654  ;;  %v1590_v6 = vpop.f32.mrf.mxu3  ;;  %v3181_v62 = vor.u32 %v3591_v59, %v3180_v53  ;;  %2270 = vmatpush.bf16.msra.mxu3 %v3381_v61 }
 0x193   :  { %v4032_v10 = vadd.f32 %v1590_v6, %v1578_v5  ;;  %v1579_v11 = vpop.f32.mrf.mxu2  ;;  %v1732_v9 = vmul.f32 %v4028_v25, %v4021_v48  ;;  %v3308_v5 = vld [vmem:[#allocation13 + $0x160] sm:$0xf]  ;;  %v3623_v6 = vld [vmem:[#allocation13 + $0x164] sm:$0xf0]  ;;  %vm1738_vm5 = vweird.f32 %v4028_v25 }
 0x194   :  { %v1712_v54 = vmul.f32 0.5, %v1692_v3  ;;  %v1716_v8 = vmul.f32 %v4026_v4, %v4026_v4  ;;  %v3245_v3 = vor.u32 %v3607_v0, %v3244_v63  ;;  %2232 = vmatpush.bf16.msra.mxu0 %v3181_v62  ;;  %v3639_v11 = vld [vmem:[#allocation13 + $0x1e4] sm:$0xf0]  ;;  %vm4067_vm8 = vmor %vm1737_vm6, %vm1738_vm5  ;;  %v3156_v63 = vld [vmem:[#allocation13 + $0x30] sm:$0xf] }
 0x195   :  { %v1618_v7 = vpop.f32.mrf.mxu1  ;;  %v1661_v14 = vsel %vm1646_vm4, %v4032_v10, 0.0  ;;  %v1677_v16 = vmul.f32 %v4032_v10, %v4032_v10  ;;  %v1733_v21 = vmul.f32 %v4028_v25, %v1732_v9  ;;  %v1773_v9 = vperm.slane %v4055_v60, 0  ;;  %v3585_v0 = vld [vmem:[#allocation13 + $0x34] sm:$0xf0] }
 0x196   :  { %v1720_v13 = vsub.f32 %v1712_v54, %v1716_v8  ;;  %v1662_v17 = vrot.slane %v1661_v14, 4  ;;  %v3309_v8 = vor.u32 %v3623_v6, %v3308_v5  ;;  %v3372_v7 = vld [vmem:[#allocation13 + $0x1e0] sm:$0xf]  ;;  %2245 = vmatpush.bf16.msra.mxu1 %v3245_v3  ;;  %v3601_v3 = vld [vmem:[#allocation13 + $0xb4] sm:$0xf0] }
 0x197   :  { %v1693_v19 = vsel %vm1646_vm4, %v1677_v16, 0.0  ;;  %v1734_v28 = vmul.f32 0.5, %v1733_v21  ;;  %v3373_v16 = vor.u32 %v3639_v11, %v3372_v7  ;;  %v3300_v21 = vld [vmem:[#allocation13 + $0x150] sm:$0xf]  ;;  %v3633_v11 = vld [vmem:[#allocation13 + $0x1b4] sm:$0xf0] }
 0x198   :  { %v1724_v18 = vmax.f32 %v1720_v13, 0.0  ;;  %v1663_v20 = vadd.f32 %v1662_v17, %v1661_v14  ;;  %v1694_v44 = vrot.slane %v1693_v19, 4  ;;  %v3172_v17 = vld [vmem:[#allocation13 + $0x50] sm:$0xf]  ;;  %2258 = vmatpush.bf16.msra.mxu2 %v3309_v8  ;;  %v3617_v8 = vld [vmem:[#allocation13 + $0x134] sm:$0xf0] }
 0x199   :  { %v1735_v43 = vsub.f32 1.5, %v1734_v28  ;;  %v3621_v28 = vld [vmem:[#allocation13 + $0x154] sm:$0xf0]  ;;  %2271 = vmatpush.bf16.msra.mxu3 %v3373_v16  ;;  %v3284_v5 = vld [vmem:[#allocation13 + $0x130] sm:$0xf] }
 0x19a   :  { %v4042_v22 = vadd.f32 1e-05, %v1724_v18  ;;  %v1664_v23 = vrot.slane %v1663_v20, 2  ;;  %v1695_v24 = vadd.f32 %v1694_v44, %v1693_v19  ;;  %v1592_v26 = vpop.f32.mrf.mxu3  ;;  %v3589_v18 = vld [vmem:[#allocation13 + $0x54] sm:$0xf0]  ;;  %v3301_v32 = vor.u32 %v3621_v28, %v3300_v21 }
 0x19b   :  { %v1736_v54 = vmul.f32 %v4028_v25, %v1735_v43  ;;  %v3173_v19 = vor.u32 %v3589_v18, %v3172_v17  ;;  %v3605_v44 = vld [vmem:[#allocation13 + $0xd4] sm:$0xf0]  ;;  %v1774_v26 = vperm.slane %v4055_v60, 1  ;;  %v3348_v7 = vld [vmem:[#allocation13 + $0x1b0] sm:$0xf]  ;;  %v3285_v17 = vor.u32 %v3617_v8, %v3284_v5 }
 0x19c   :  { %3656 = vrsqrt.f32 %v4042_v22  ;;  %v1665_v27 = vadd.f32 %v1664_v23, %v1663_v20  ;;  %v1696_v15 = vrot.slane %v1695_v24, 2  ;;  %v3236_v20 = vld [vmem:[#allocation13 + $0xd0] sm:$0xf]  ;;  %vm1747_vm9 = vweird.f32 %v4042_v22  ;;  %2259 = vmatpush.bf16.msra.mxu2 %v3301_v32  ;;  %v3212_v21 = vld [vmem:[#allocation13 + $0xa0] sm:$0xf] }
 0x19d   :  { %v3237_v48 = vor.u32 %v3605_v44, %v3236_v20  ;;  %2233 = vmatpush.bf16.msra.mxu0 %v3173_v19  ;;  %v3349_v18 = vor.u32 %v3633_v11, %v3348_v7  ;;  %v3148_v19 = vld [vmem:[#allocation13 + $0x20] sm:$0xf]  ;;  %v3583_v20 = vld [vmem:[#allocation13 + $0x24] sm:$0xf0] }
 0x19e   :  { %v1666_v29 = vrot.slane %v1665_v27, 1  ;;  %v1697_v30 = vadd.f32 %v1696_v15, %v1695_v24  ;;  %v3599_v23 = vld [vmem:[#allocation13 + $0xa4] sm:$0xf0]  ;;  %v3260_v8 = vld [vmem:[#allocation13 + $0x100] sm:$0xf] }
 0x19f   :  { %2246 = vmatpush.bf16.msra.mxu1 %v3237_v48  ;;  %v3276_v48 = vld [vmem:[#allocation13 + $0x120] sm:$0xf]  ;;  %v3615_v28 = vld [vmem:[#allocation13 + $0x124] sm:$0xf0] }
 0x1a0   :  { %v1667_v36 = vadd.f32 %v1666_v29, %v1665_v27  ;;  %v1698_v39 = vrot.slane %v1697_v30, 1  ;;  %v1604_v27 = vadd.f32 %v4017_v42, %v793_v50  ;;  %v3364_v29 = vld [vmem:[#allocation13 + $0x1d0] sm:$0xf]  ;;  %v3356_v50 = vld [vmem:[#allocation13 + $0x1c0] sm:$0xf] }
 0x1a1   :  { %v3611_v7 = vld [vmem:[#allocation13 + $0x104] sm:$0xf0] }
 0x1a2   :  { %v4045_v56 = vpop.eup %3656  ;;  %v1699_v51 = vadd.f32 %v1698_v39, %v1697_v30  ;;  %v4050_v52 = vmul.f32 0.5, %v1667_v36  ;;  %v1740_v30 = vsel %vm4067_vm8, %v4028_v25, %v1736_v54  ;;  %v1617_v38 = vadd.f32 %v4023_v58, %v1604_v27  ;;  %v3164_v25 = vld [vmem:[#allocation13 + $0x40] sm:$0xf]  ;;  %v3587_v39 = vld [vmem:[#allocation13 + $0x44] sm:$0xf0] }
 0x1a3   :  { %v1742_v49 = vmul.f32 %v4045_v56, %v4042_v22  ;;  %vm1748_vm7 = vweird.f32 %v4045_v56  ;;  %v3365_v36 = vor.u32 %v3637_v34, %v3364_v29  ;;  %v3165_v22 = vor.u32 %v3587_v39, %v3164_v25  ;;  %v3635_v58 = vld [vmem:[#allocation13 + $0x1c4] sm:$0xf0]  ;;  %2247 = vmatpush.bf16.msra.mxu1 %v3229_v47  ;;  %v3204_v39 = vld [vmem:[#allocation13 + $0x90] sm:$0xf]  ;;  %v3613_v47 = vld [vmem:[#allocation13 + $0x114] sm:$0xf0] }
 0x1a4   :  { %v1713_v2 = vmul.f32 0.5, %v1699_v51  ;;  %v1717_v57 = vmul.f32 %v4050_v52, %v4050_v52  ;;  %vm4080_vm10 = vmor %vm1747_vm9, %vm1748_vm7  ;;  %v4085_v43 = vmul.f32 %v1773_v9, %v1740_v30  ;;  %v3357_v61 = vor.u32 %v3635_v58, %v3356_v50  ;;  %v3340_v30 = vld [vmem:[#allocation13 + $0x1a0] sm:$0xf]  ;;  %v3332_v50 = vld [vmem:[#allocation13 + $0x190] sm:$0xf] }
 0x1a5   :  { %v1743_v1 = vmul.f32 %v4045_v56, %v1742_v49  ;;  %v3619_v49 = vld [vmem:[#allocation13 + $0x144] sm:$0xf0]  ;;  %2272 = vmatpush.bf16.msra.mxu3 %v3365_v36  ;;  %2234 = vmatpush.bf16.msra.mxu0 %v3165_v22  ;;  %v3149_v27 = vor.u32 %v3583_v20, %v3148_v19  ;;  %v3277_v29 = vor.u32 %v3615_v28, %v3276_v48  ;;  %v3581_v36 = vld [vmem:[#allocation13 + $0x14] sm:$0xf0]  ;;  %v3382_v48 = vld [vmem:[#allocation13 + $0x1f8] sm:$0xf0] }
 0x1a6   :  { %v1721_v14 = vsub.f32 %v1713_v2, %v1717_v57  ;;  %v3293_v59 = vor.u32 %v3619_v49, %v3292_v41  ;;  %v3157_v57 = vor.u32 %v3585_v0, %v3156_v63  ;;  %v1786_v9 = vmul.f32 %v4085_v43, %v4007_v33  ;;  %v3597_v22 = vld [vmem:[#allocation13 + $0x94] sm:$0xf0]  ;;  %v3132_v63 = vld [vmem:[#allocation13] sm:$0xf] }
 0x1a7   :  { %v1744_v13 = vmul.f32 0.5, %v1743_v1  ;;  %v3220_v1 = vld [vmem:[#allocation13 + $0xb0] sm:$0xf]  ;;  %v3629_v58 = vld [vmem:[#allocation13 + $0x194] sm:$0xf0]  ;;  %v3261_v11 = vor.u32 %v3611_v7, %v3260_v8 }
 0x1a8   :  { %v1725_v31 = vmax.f32 %v1721_v14, 0.0  ;;  %2260 = vmatpush.bf16.msra.mxu2 %v3293_v59  ;;  %v3221_v54 = vor.u32 %v3601_v3, %v3220_v1  ;;  %v3579_v1 = vld [vmem:[#allocation13 + $0x4] sm:$0xf0]  ;;  %v3602_v8 = vld [vmem:[#allocation13 + $0xc4] sm:$0xf] }
 0x1a9   :  { %v1745_v24 = vsub.f32 1.5, %v1744_v13  ;;  %2273 = vmatpush.bf16.msra.mxu3 %v3357_v61  ;;  %2235 = vmatpush.bf16.msra.mxu0 %v3157_v57  ;;  %v3595_v57 = vld [vmem:[#allocation13 + $0x84] sm:$0xf0]  ;;  %v3230_v7 = vld [vmem:[#allocation13 + $0xc8] sm:$0xf0] }
 0x1aa   :  { %v4092_v53 = vadd.f32 1e-05, %v1725_v31  ;;  %2248 = vmatpush.bf16.msra.mxu1 %v3221_v54  ;;  %v3631_v31 = vld [vmem:[#allocation13 + $0x1a4] sm:$0xf0] }
 0x1ab   :  { %v1629_v15 = vpop.f32.mrf.mxu2  ;;  %v1746_v37 = vmul.f32 %v4045_v56, %v1745_v24  ;;  %v3341_v42 = vor.u32 %v3631_v31, %v3340_v30  ;;  %v3590_v31 = vld [vmem:[#allocation13 + $0x64] sm:$0xf] }
 0x1ac   :  { %v1630_v46 = vadd.f32 %v1629_v15, %v1617_v38  ;;  %3658 = vrsqrt.f32 %v4092_v53  ;;  %2261 = vmatpush.bf16.msra.mxu2 %v3285_v17  ;;  %v3213_v15 = vor.u32 %v3599_v23, %v3212_v21  ;;  %v3140_v38 = vld [vmem:[#allocation13 + $0x10] sm:$0xf]  ;;  %v3190_v17 = vld [vmem:[#allocation13 + $0x78] sm:$0xf0]  ;;  %v3624_v21 = vld [vmem:[#allocation13 + $0x174] sm:$0xf]  ;;  %vm1757_vm13 = vweird.f32 %v4092_v53 }
 0x1ad   :  { %v1750_v45 = vsel %vm4080_vm10, %v4045_v56, %v1746_v37  ;;  %2274 = vmatpush.bf16.msra.mxu3 %v3349_v18  ;;  %2236 = vmatpush.bf16.msra.mxu0 %v3149_v27  ;;  %v3141_v25 = vor.u32 %v3581_v36, %v3140_v38  ;;  %v3608_v18 = vld [vmem:[#allocation13 + $0xf4] sm:$0xf]  ;;  %v3318_v23 = vld [vmem:[#allocation13 + $0x178] sm:$0xf0]  ;;  %v3246_v38 = vld [vmem:[#allocation13 + $0xe8] sm:$0xf0] }
 0x1ae   :  { %v4090_v51 = vmul.f32 %v1774_v26, %v1750_v45  ;;  %2249 = vmatpush.bf16.msra.mxu1 %v3213_v15  ;;  %v3205_v45 = vor.u32 %v3597_v22, %v3204_v39  ;;  %v3640_v15 = vld [vmem:[#allocation13 + $0x1f4] sm:$0xf]  ;;  %v3622_v36 = vld [vmem:[#allocation13 + $0x164] sm:$0xf]  ;;  %v3310_v39 = vld [vmem:[#allocation13 + $0x168] sm:$0xf0] }
 0x1af   :  { %v3385_v30 = vor.u32 %v3640_v15, %v3382_v48  ;;  %v3638_v22 = vld [vmem:[#allocation13 + $0x1e4] sm:$0xf]  ;;  %v3286_v15 = vld [vmem:[#allocation13 + $0x138] sm:$0xf0] }
 0x1b0   :  { %v1787_v56 = vmul.f32 %v4090_v51, %v4026_v4  ;;  %2262 = vmatpush.bf16.msra.mxu2 %v3277_v29  ;;  %v3321_v29 = vor.u32 %v3624_v21, %v3318_v23  ;;  %v3158_v21 = vld [vmem:[#allocation13 + $0x38] sm:$0xf0]  ;;  %v3600_v23 = vld [vmem:[#allocation13 + $0xb4] sm:$0xf] }
 0x1b1   :  { %2275 = vmatpush.bf16.msra.mxu3 %v3341_v42  ;;  %2237 = vmatpush.bf16.msra.mxu0 %v3141_v25 }
 0x1b2   :  { %v1642_v62 = vpop.f32.mrf.mxu3  ;;  %v1794_v13 = vrot.slane %v1787_v56, 7  ;;  %v4109_v55 = vpop.eup %3658  ;;  %2250 = vmatpush.bf16.msra.mxu1 %v3205_v45  ;;  %v3196_v56 = vld [vmem:[#allocation13 + $0x80] sm:$0xf] }
 0x1b3   :  { %v4096_v2 = vadd.f32 %v1642_v62, %v1630_v46  ;;  %v1631_v6 = vpop.f32.mrf.mxu2  ;;  %v3268_v46 = vld [vmem:[#allocation13 + $0x110] sm:$0xf]  ;;  %v3333_v62 = vor.u32 %v3629_v58, %v3332_v50  ;;  %v1752_v0 = vmul.f32 %v4109_v55, %v4092_v53  ;;  %v3197_v54 = vor.u32 %v3595_v57, %v3196_v56  ;;  %v3174_v50 = vld [vmem:[#allocation13 + $0x58] sm:$0xf0] }
 0x1b4   :  { %v4106_v44 = vsel %vm1797_vm11, %v1786_v9, %v1794_v13  ;;  %v3269_v49 = vor.u32 %v3613_v47, %v3268_v46  ;;  %v3133_v6 = vor.u32 %v3579_v1, %v3132_v63  ;;  %v3324_v9 = vld [vmem:[#allocation13 + $0x180] sm:$0xf]  ;;  %v3627_v13 = vld [vmem:[#allocation13 + $0x184] sm:$0xf0]  ;;  %v3313_v46 = vor.u32 %v3622_v36, %v3310_v39  ;;  %v3636_v1 = vld [vmem:[#allocation13 + $0x1d4] sm:$0xf] }
 0x1b5   :  { %v1668_v14 = vsel %vm1646_vm4, %v4096_v2, 0.0  ;;  %v1678_v4 = vmul.f32 %v4096_v2, %v4096_v2  ;;  %2276 = vmatpush.bf16.msra.mxu3 %v3333_v62  ;;  %v3325_v19 = vor.u32 %v3627_v13, %v3324_v9  ;;  %v3620_v62 = vld [vmem:[#allocation13 + $0x154] sm:$0xf]  ;;  %v3294_v13 = vld [vmem:[#allocation13 + $0x148] sm:$0xf0]  ;;  %vm1758_vm12 = vweird.f32 %v4109_v55 }
 0x1b6   :  { %v1669_v16 = vrot.slane %v1668_v14, 4  ;;  %2263 = vmatpush.bf16.msra.mxu2 %v3269_v49  ;;  %2238 = vmatpush.bf16.msra.mxu0 %v3133_v6  ;;  %v3588_v49 = vld [vmem:[#allocation13 + $0x54] sm:$0xf]  ;;  %v3166_v6 = vld [vmem:[#allocation13 + $0x48] sm:$0xf0]  ;;  %vm4131_vm14 = vmor %vm1757_vm13, %vm1758_vm12 }
 0x1b7   :  { %v1700_v33 = vsel %vm1646_vm4, %v1678_v4, 0.0  ;;  %2251 = vmatpush.bf16.msra.mxu1 %v3197_v54  ;;  %v3177_v58 = vor.u32 %v3588_v49, %v3174_v50  ;;  %v3614_v39 = vld [vmem:[#allocation13 + $0x124] sm:$0xf]  ;;  %v1775_v49 = vperm.slane %v4055_v60, 2  ;;  %v3580_v50 = vld [vmem:[#allocation13 + $0x14] sm:$0xf] }
 0x1b8   :  { %v1670_v24 = vadd.f32 %v1669_v16, %v1668_v14  ;;  %v1701_v26 = vrot.slane %v1700_v33, 4  ;;  %v3592_v14 = vld [vmem:[#allocation13 + $0x74] sm:$0xf] }
 0x1b9   :  { %v3193_v20 = vor.u32 %v3592_v14, %v3190_v17  ;;  %2277 = vmatpush.bf16.msra.mxu3 %v3325_v19  ;;  %v3634_v14 = vld [vmem:[#allocation13 + $0x1c4] sm:$0xf] }
 0x1ba   :  { %v1671_v32 = vrot.slane %v1670_v24, 2  ;;  %v1702_v34 = vadd.f32 %v1701_v26, %v1700_v33  ;;  %v1644_v37 = vpop.f32.mrf.mxu3  ;;  %v3254_v33 = vld [vmem:[#allocation13 + $0xf8] sm:$0xf0]  ;;  %2264 = vmatpush.bf16.msra.mxu2 %v3261_v11  ;;  %v3618_v11 = vld [vmem:[#allocation13 + $0x144] sm:$0xf] }
 0x1bb   :  { %2283 = vmatpush.bf16.msrb.mxu0 %v3193_v20  ;;  %v3257_v28 = vor.u32 %v3608_v18, %v3254_v33  ;;  %v3233_v18 = vor.u32 %v3602_v8, %v3230_v7  ;;  %v3297_v19 = vor.u32 %v3618_v11, %v3294_v13  ;;  %v3584_v33 = vld [vmem:[#allocation13 + $0x34] sm:$0xf]  ;;  %v3334_v8 = vld [vmem:[#allocation13 + $0x198] sm:$0xf0]  ;;  %v3578_v11 = vld [vmem:[#allocation13 + $0x4] sm:$0xf] }
 0x1bc   :  { %v1672_v40 = vadd.f32 %v1671_v32, %v1670_v24  ;;  %v1703_v41 = vrot.slane %v1702_v34, 2  ;;  %v1753_v24 = vmul.f32 %v4109_v55, %v1752_v0  ;;  %v3182_v32 = vld [vmem:[#allocation13 + $0x68] sm:$0xf0]  ;;  %v3302_v0 = vld [vmem:[#allocation13 + $0x158] sm:$0xf0] }
 0x1bd   :  { %v3185_v42 = vor.u32 %v3590_v31, %v3182_v32  ;;  %2296 = vmatpush.bf16.msrb.mxu1 %v3257_v28  ;;  %2322 = vmatpush.bf16.msrb.mxu3 %v3385_v30  ;;  %v3305_v57 = vor.u32 %v3620_v62, %v3302_v0  ;;  %v3350_v30 = vld [vmem:[#allocation13 + $0x1b8] sm:$0xf0]  ;;  %v3582_v31 = vld [vmem:[#allocation13 + $0x24] sm:$0xf]  ;;  %v3596_v0 = vld [vmem:[#allocation13 + $0x94] sm:$0xf] }
 0x1be   :  { %v1673_v59 = vrot.slane %v1672_v40, 1  ;;  %v1704_v61 = vadd.f32 %v1703_v41, %v1702_v34  ;;  %v3606_v34 = vld [vmem:[#allocation13 + $0xe4] sm:$0xf]  ;;  %2309 = vmatpush.bf16.msrb.mxu2 %v3321_v29  ;;  %v1754_v41 = vmul.f32 0.5, %v1753_v24  ;;  %v3161_v24 = vor.u32 %v3584_v33, %v3158_v21  ;;  %v3632_v29 = vld [vmem:[#allocation13 + $0x1b4] sm:$0xf] }
 0x1bf   :  { %v3249_v25 = vor.u32 %v3606_v34, %v3246_v38  ;;  %2284 = vmatpush.bf16.msrb.mxu0 %v3185_v42  ;;  %v3150_v42 = vld [vmem:[#allocation13 + $0x28] sm:$0xf0]  ;;  %v3598_v38 = vld [vmem:[#allocation13 + $0xa4] sm:$0xf]  ;;  %v3353_v36 = vor.u32 %v3632_v29, %v3350_v30 }
 0x1c0   :  { %v1674_v3 = vadd.f32 %v1673_v59, %v1672_v40  ;;  %v1705_v5 = vrot.slane %v1704_v61, 1  ;;  %v3374_v40 = vld [vmem:[#allocation13 + $0x1e8] sm:$0xf0]  ;;  %v3604_v59 = vld [vmem:[#allocation13 + $0xd4] sm:$0xf]  ;;  %v1755_v17 = vsub.f32 1.5, %v1754_v41  ;;  %v3153_v41 = vor.u32 %v3582_v31, %v3150_v42 }
 0x1c1   :  { %v3377_v47 = vor.u32 %v3638_v22, %v3374_v40  ;;  %2297 = vmatpush.bf16.msrb.mxu1 %v3249_v25  ;;  %v3214_v25 = vld [vmem:[#allocation13 + $0xa8] sm:$0xf0]  ;;  %v1785_v42 = vld [vmem:[#allocation11] sm:$0xf] }
 0x1c2   :  { %v1706_v4 = vadd.f32 %v1705_v5, %v1704_v61  ;;  %v4113_v16 = vmul.f32 0.5, %v1674_v3  ;;  %v3238_v61 = vld [vmem:[#allocation13 + $0xd8] sm:$0xf0]  ;;  %2310 = vmatpush.bf16.msrb.mxu2 %v3313_v46  ;;  %v3586_v5 = vld [vmem:[#allocation13 + $0x44] sm:$0xf]  ;;  %v1756_v28 = vmul.f32 %v4109_v55, %v1755_v17 }
 0x1c3   :  { %v3241_v56 = vor.u32 %v3604_v59, %v3238_v61  ;;  %v3366_v3 = vld [vmem:[#allocation13 + $0x1d8] sm:$0xf0]  ;;  %2323 = vmatpush.bf16.msrb.mxu3 %v3377_v47  ;;  %2285 = vmatpush.bf16.msrb.mxu0 %v3177_v58  ;;  %v3169_v9 = vor.u32 %v3586_v5, %v3166_v6  ;;  %v3278_v22 = vld [vmem:[#allocation13 + $0x128] sm:$0xf0]  ;;  %v3217_v61 = vor.u32 %v3598_v38, %v3214_v25 }
 0x1c4   :  { %v1714_v26 = vmul.f32 0.5, %v1706_v4  ;;  %v1718_v27 = vmul.f32 %v4113_v16, %v4113_v16  ;;  %v3369_v54 = vor.u32 %v3636_v1, %v3366_v3  ;;  %v3358_v4 = vld [vmem:[#allocation13 + $0x1c8] sm:$0xf0]  ;;  %v3142_v58 = vld [vmem:[#allocation13 + $0x18] sm:$0xf0]  ;;  %v1760_v53 = vsel %vm4131_vm14, %v4109_v55, %v1756_v28 }
 0x1c5   :  { %2298 = vmatpush.bf16.msrb.mxu1 %v3241_v56  ;;  %v3361_v20 = vor.u32 %v3634_v14, %v3358_v4  ;;  %v3342_v46 = vld [vmem:[#allocation13 + $0x1a8] sm:$0xf0]  ;;  %v3281_v62 = vor.u32 %v3614_v39, %v3278_v22  ;;  %v3206_v56 = vld [vmem:[#allocation13 + $0x98] sm:$0xf0]  ;;  %v3145_v6 = vor.u32 %v3580_v50, %v3142_v58  ;;  %v1783_v7 = vmul.f32 %v1775_v49, %v1760_v53 }
 0x1c6   :  { %v1722_v37 = vsub.f32 %v1714_v26, %v1718_v27  ;;  %2311 = vmatpush.bf16.msrb.mxu2 %v3305_v57  ;;  %v3222_v26 = vld [vmem:[#allocation13 + $0xb8] sm:$0xf0]  ;;  %v3616_v27 = vld [vmem:[#allocation13 + $0x134] sm:$0xf]  ;;  %v1776_v55 = vperm.slane %v4055_v60, 3  ;;  %v3209_v4 = vor.u32 %v3596_v0, %v3206_v56 }
 0x1c7   :  { %2324 = vmatpush.bf16.msrb.mxu3 %v3369_v54  ;;  %2286 = vmatpush.bf16.msrb.mxu0 %v3169_v9  ;;  %v3225_v34 = vor.u32 %v3600_v23, %v3222_v26  ;;  %v3612_v57 = vld [vmem:[#allocation13 + $0x114] sm:$0xf]  ;;  %v3270_v3 = vld [vmem:[#allocation13 + $0x118] sm:$0xf0]  ;;  %v3134_v9 = vld [vmem:[#allocation13 + $0x8] sm:$0xf0]  ;;  %v1788_v26 = vmul.f32 %v1783_v7, %v4050_v52 }
 0x1c8   :  { %v1726_v45 = vmax.f32 %v1722_v37, 0.0  ;;  %v3289_v37 = vor.u32 %v3616_v27, %v3286_v15  ;;  %v3628_v54 = vld [vmem:[#allocation13 + $0x194] sm:$0xf]  ;;  %v3273_v17 = vor.u32 %v3612_v57, %v3270_v3  ;;  %v3262_v60 = vld [vmem:[#allocation13 + $0x108] sm:$0xf0]  ;;  %v3137_v21 = vor.u32 %v3578_v11, %v3134_v9 }
 0x1c9   :  { %2299 = vmatpush.bf16.msrb.mxu1 %v3233_v18  ;;  %v3594_v18 = vld [vmem:[#allocation13 + $0x84] sm:$0xf]  ;;  %v1795_v31 = vrot.slane %v1788_v26, 6 }
 0x1ca   :  { %v4118_v63 = vadd.f32 1e-05, %v1726_v45  ;;  %2312 = vmatpush.bf16.msrb.mxu2 %v3297_v19  ;;  %v3630_v45 = vld [vmem:[#allocation13 + $0x1a4] sm:$0xf]  ;;  %v3337_v19 = vor.u32 %v3628_v54, %v3334_v8  ;;  %v1905_v8 = vld [vmem:[%s4179_s8] sm:$0x3] }
 0x1cb   :  { %2325 = vmatpush.bf16.msrb.mxu3 %v3361_v20  ;;  %2287 = vmatpush.bf16.msrb.mxu0 %v3161_v24  ;;  %v3345_v1 = vor.u32 %v3630_v45, %v3342_v46  ;;  %v3610_v20 = vld [vmem:[#allocation13 + $0x104] sm:$0xf]  ;;  %v3326_v24 = vld [vmem:[#allocation13 + $0x188] sm:$0xf0] }
 0x1cc   :  { %3660 = vrsqrt.f32 %v4118_v63  ;;  %vm1767_vm0 = vweird.f32 %v4118_v63  ;;  %v3626_v23 = vld [vmem:[#allocation13 + $0x184] sm:$0xf]  ;;  %v3265_v28 = vor.u32 %v3610_v20, %v3262_v60  ;;  %v1907_v20 = vperm.slane %v1905_v8, 0 }
 0x1cd   :  { %2300 = vmatpush.bf16.msrb.mxu1 %v3225_v34  ;;  %v3329_v30 = vor.u32 %v3626_v23, %v3326_v24  ;;  %v1805_v34 = vperm.slane %v4090_v51, 0 }
 0x1ce   :  { %2313 = vmatpush.bf16.msrb.mxu2 %v3289_v37  ;;  %v1806_v37 = vperm.slane %v1783_v7, 0 }
 0x1cf   :  { %2326 = vmatpush.bf16.msrb.mxu3 %v3353_v36  ;;  %2288 = vmatpush.bf16.msrb.mxu0 %v3153_v41  ;;  %v1809_v39 = vmul.f32 %v1805_v34, %v4009_v35 }
 0x1d0   :  { %v1810_v22 = vmul.f32 %v1806_v37, %v4032_v10 }
 0x1d1   :  { %2301 = vmatpush.bf16.msrb.mxu1 %v3217_v61 }
 0x1d2   :  { %v4121_v48 = vpop.eup %3660  ;;  %2314 = vmatpush.bf16.msrb.mxu2 %v3281_v62 }
 0x1d3   :  { %v1762_v32 = vmul.f32 %v4121_v48, %v4118_v63  ;;  %vm1768_vm15 = vweird.f32 %v4121_v48  ;;  %2327 = vmatpush.bf16.msrb.mxu3 %v3345_v1  ;;  %v3198_v63 = vld [vmem:[#allocation13 + $0x88] sm:$0xf0]  ;;  %2289 = vmatpush.bf16.msrb.mxu0 %v3145_v6 }
 0x1d4   :  { %vm4145_vm1 = vmor %vm1767_vm0, %vm1768_vm15  ;;  %v3201_v15 = vor.u32 %v3594_v18, %v3198_v63 }
 0x1d5   :  { %v1763_v40 = vmul.f32 %v4121_v48, %v1762_v32  ;;  %2302 = vmatpush.bf16.msrb.mxu1 %v3209_v4 }
 0x1d6   :  { %2315 = vmatpush.bf16.msrb.mxu2 %v3273_v17 }
 0x1d7   :  { %v1764_v59 = vmul.f32 0.5, %v1763_v40  ;;  %2328 = vmatpush.bf16.msrb.mxu3 %v3337_v19  ;;  %2290 = vmatpush.bf16.msrb.mxu0 %v3137_v21 }
 0x1d9   :  { %v1765_v5 = vsub.f32 1.5, %v1764_v59  ;;  %2303 = vmatpush.bf16.msrb.mxu1 %v3201_v15 }
 0x1da   :  { %2316 = vmatpush.bf16.msrb.mxu2 %v3265_v28 }
 0x1db   :  { %v1766_v13 = vmul.f32 %v4121_v48, %v1765_v5  ;;  %2329 = vmatpush.bf16.msrb.mxu3 %v3329_v30 }
 0x1dd   :  { %v1770_v33 = vsel %vm4145_vm1, %v4121_v48, %v1766_v13  ;;  %v1804_v48 = vperm.slane %v4085_v43, 0 }
 0x1de   :  { %v1784_v27 = vmul.f32 %v1776_v55, %v1770_v33  ;;  %v1908_v55 = vperm.slane %v1905_v8, 1 }
 0x1df   :  { %v1808_v25 = vmul.f32 %v1804_v48, %v4000_v12 }
 0x1e0   :  { %v1789_v29 = vmul.f32 %v1784_v27, %v4113_v16  ;;  %v1807_v52 = vperm.slane %v1784_v27, 0 }
 0x1e2   :  { %v1796_v32 = vrot.slane %v1789_v29, 5  ;;  %v1811_v43 = vmul.f32 %v1807_v52, %v4096_v2  ;;  %v2335_v29 = vld [vmem:[%s4180_s9] sm:$0x3] }
 0x1e4   :  { %v1800_v38 = vsel %vm1799_vm2, %v1795_v31, %v1796_v32 }
 0x1e5   :  { %v1801_v16 = vsel %vm1646_vm4, %v4106_v44, %v1800_v38 }
 0x1e6   :  { %v1803_v36 = vsub.f32 %v1785_v42, %v1801_v16 }
 0x1e8   :  { %v1816_v51 = vperm.slane %v1803_v36, 3  ;;  %v1813_v40 = vperm.slane %v1803_v36, 0  ;;  %v1814_v41 = vperm.slane %v1803_v36, 1  ;;  %v1815_v45 = vperm.slane %v1803_v36, 2 }
 0x1ea   :  { %v1824_v46 = vadd.f32 %v1816_v51, %v1811_v43  ;;  %v1821_v47 = vadd.f32 %v1813_v40, %v1808_v25  ;;  %v1822_v49 = vadd.f32 %v1814_v41, %v1809_v39  ;;  %v1823_v50 = vadd.f32 %v1815_v45, %v1810_v22 }
 0x1ec   :  { %v1832_v58 = vmul.f32 0.2, %v1824_v46  ;;  %vm1825_vm3 = vcmp.gt.f32.partialorder %v1821_v47, 0.0  ;;  %v1829_v44 = vmul.f32 0.2, %v1821_v47  ;;  %vm1826_vm4 = vcmp.gt.f32.partialorder %v1822_v49, 0.0 }
 0x1ed   :  { %v1830_v53 = vmul.f32 0.2, %v1822_v49  ;;  %vm1827_vm5 = vcmp.gt.f32.partialorder %v1823_v50, 0.0  ;;  %v1831_v12 = vmul.f32 0.2, %v1823_v50  ;;  %vm1828_vm6 = vcmp.gt.f32.partialorder %v1824_v46, 0.0 }
 0x1ee   :  { %v1833_v35 = vsel %vm1825_vm3, %v1821_v47, %v1829_v44  ;;  %v1836_v10 = vsel %vm1828_vm6, %v1824_v46, %v1832_v58 }
 0x1ef   :  { %v1837_v59 = vpack.c.bf16 %v1833_v35, %v1833_v35  ;;  %v1834_v2 = vsel %vm1826_vm4, %v1822_v49, %v1830_v53  ;;  %v1835_v61 = vsel %vm1827_vm5, %v1823_v50, %v1831_v12  ;;  %v1840_v62 = vpack.c.bf16 %v1836_v10, %v1836_v10 }
 0x1f0   :  { %v1838_v0 = vpack.c.bf16 %v1834_v2, %v1834_v2  ;;  %v1839_v1 = vpack.c.bf16 %v1835_v61, %v1835_v61 }
 0x1f1   :  { %2239 = vmatmul.bf16.vlgmr.msra.gmra.mxu0 %v1837_v59  ;;  %2278 = vmatmul.bf16.vlgmr.msra.gmra.mxu3 %v1840_v62 }
 0x1f2   :  { %2252 = vmatmul.bf16.vlgmr.msra.gmra.mxu1 %v1838_v0  ;;  %2265 = vmatmul.bf16.vlgmr.msra.gmra.mxu2 %v1839_v1 }
 0x201   :  { %2291 = vmatmul.bf16.vlgmr.msrb.gmra.mxu0 %v1837_v59  ;;  %2330 = vmatmul.bf16.vlgmr.msrb.gmra.mxu3 %v1840_v62 }
 0x202   :  { %2304 = vmatmul.bf16.vlgmr.msrb.gmra.mxu1 %v1838_v0  ;;  %2317 = vmatmul.bf16.vlgmr.msrb.gmra.mxu2 %v1839_v1 }
 0x26e   :  { %v2240_v56 = vpop.f32.mrf.mxu0 }
 0x26f   :  { %v2253_v57 = vpop.f32.mrf.mxu1  ;;  %v2241_v23 = vadd.f32 %v2240_v56, %v1907_v20 }
 0x271   :  { %v2254_v15 = vadd.f32 %v2253_v57, %v2241_v23 }
 0x274   :  { %v2279_v3 = vpop.f32.mrf.mxu3 }
 0x275   :  { %v2266_v5 = vpop.f32.mrf.mxu2 }
 0x276   :  { %v2242_v6 = vpop.f32.mrf.mxu0  ;;  %v2267_v28 = vadd.f32 %v2266_v5, %v2254_v15 }
 0x277   :  { %v2255_v54 = vpop.f32.mrf.mxu1 }
 0x278   :  { %v2280_v31 = vadd.f32 %v2279_v3, %v2267_v28 }
 0x27c   :  { %v2281_v7 = vpop.f32.mrf.mxu3 }
 0x27d   :  { %v2268_v11 = vpop.f32.mrf.mxu2 }
 0x27e   :  { %v2292_v9 = vpop.f32.mrf.mxu0 }
 0x27f   :  { %v2305_v13 = vpop.f32.mrf.mxu1  ;;  %v2293_v14 = vadd.f32 %v2292_v9, %v1908_v55 }
 0x281   :  { %v2306_v4 = vadd.f32 %v2305_v13, %v2293_v14 }
 0x284   :  { %v2331_v17 = vpop.f32.mrf.mxu3 }
 0x285   :  { %v2318_v18 = vpop.f32.mrf.mxu2 }
 0x286   :  { %v2319_v19 = vadd.f32 %v2318_v18, %v2306_v4  ;;  %v2294_v63 = vpop.f32.mrf.mxu0 }
 0x287   :  { %v2307_v60 = vpop.f32.mrf.mxu1 }
 0x288   :  { %v2332_v33 = vadd.f32 %v2331_v17, %v2319_v19 }
 0x28a   :  { %v2336_v21 = vmul.f32 0.5, %v2332_v33 }
 0x28c   :  { %v2337_v24 = vmul.f32 1.442695, %v2336_v21  ;;  %v2333_v26 = vpop.f32.mrf.mxu3 }
 0x28d   :  { %v2320_v27 = vpop.f32.mrf.mxu2 }
 0x28e   :  { %3662 = vpow2.f32 %v2337_v24 }
 0x294   :  { %v3663_v30 = vpop.eup %3662 }
 0x295   :  { %v2339_v32 = vmul.f32 %v3663_v30, %v2335_v29 }
 0x297   :  { %v2340_v48 = vadd.f32 %v2339_v32, %v2280_v31 }
 0x299   :  { %2341 = vst [vmem:[#allocation14] sm:$0x3] %v2340_v48 }
 0x29a   :  { %2352 = dma.vmem_to_hbm [thread:$0]  %s2348_s29, 32, %s2350_s3, [#allocation4]  }
 0x29b   :  { %3864 = dma.done.wait [#allocation4], 32  }
 0x29c   :  { %3865 = vsyncadd [#allocation4], 4294967264 }
 0x29d   :  { %2357 = vsyncpa [#allocation3], 1 }
 0x29e   :  { %2358 = vsyncpa [#allocation6], 1 }
 0x29f   :  { %2359 = vsyncpa [#allocation9], 1 }
 0x2a0   :  { %2360 = vsyncpa [#allocation12], 1 }
 0x2a1   :  { %2361 = vsyncpa [#allocation4], 1 }

</bundles_post_ra>
